<compile_context>
chip_gen: v5e
topology: v5e:2x2
jax: 0.10.0
libtpu: 0.0.40
codegen_flags: <defaults>
</compile_context>

<pallas_src>
from functools import partial

import jax
import jax.numpy as jnp
from jax.experimental import pallas as pl
from jax.experimental.pallas import tpu as pltpu

N_NODES = 16
INPUT_DIM = 8
HIDDEN_DIM = 32   # hidden_dim -> emb Linear exists; GConvGRU runs on HIDDEN_DIM
OUTPUT_DIM = 4
K = 2             # Chebyshev order used by GConvGRU
LANES = 128       # lane-dense padded width for readout / hidden-state bands

# ----- parameter slab row layout (all sections lane-padded to 128) -----------
F = HIDDEN_DIM
ROW_WEMB = 0                    # (INPUT_DIM, F)     embedding weight
ROW_W0X = ROW_WEMB + 8          # (F, 3F)  x-path Chebyshev T0 weights [z|r|h]
ROW_W1X = ROW_W0X + F           # (F, 3F)  x-path Chebyshev T1 weights [z|r|h]
ROW_W0ZR = ROW_W1X + F          # (F, 2F)  h-path T0 weights [z|r]
ROW_W1ZR = ROW_W0ZR + F         # (F, 2F)  h-path T1 weights [z|r]
ROW_W0C = ROW_W1ZR + F          # (F, F)   candidate h-path T0 weight
ROW_W1C = ROW_W0C + F           # (F, F)   candidate h-path T1 weight
ROW_WRO = ROW_W1C + F           # (F, 128) lane-dense padded readout weight
ROW_BEMB = ROW_WRO + F          # row: embedding bias (lanes 0:F)
ROW_BGATE = ROW_BEMB + 1        # row: pre-summed gate biases (lanes 0:3F)
ROW_BRO = ROW_BGATE + 1         # row: lane-dense padded readout bias
SLAB_ROWS = ROW_BEMB + 8        # 240 rows total (bias band padded to 8 rows)


def gcrn_gru_kernel(lhat_ref, x_ref, h0_ref, w_ref, out_ref, hin_scr, hid_scr):
    t = pl.program_id(0)

    @pl.when(t == 0)
    def _init():
        # embedding Linear: h = x @ W_emb + b_emb (only once; recurrence below
        # then feeds tanh(H_new) back in as the next conv input)
        h_emb = (jnp.dot(x_ref[...], w_ref[ROW_WEMB:ROW_WEMB + INPUT_DIM, :F],
                         preferred_element_type=jnp.float32)
                 + w_ref[ROW_BEMB:ROW_BEMB + 1, :F])
        hin_scr[...] = h_emb
        hid_scr[...] = h0_ref[...]

    lhat = lhat_ref[...]          # (N, N) scaled Chebyshev Laplacian
    h = hin_scr[...]              # (N, F) conv input for this step
    H = hid_scr[...]              # (N, F) previous hidden state

    # Chebyshev T1 propagation: two contiguous-operand matmuls (no [h|H] concat)
    Lh = jnp.dot(lhat, h, preferred_element_type=jnp.float32)
    LH = jnp.dot(lhat, H, preferred_element_type=jnp.float32)

    # x-path, all 3 gates stacked [z|r|h]: h @ W0 + (L@h) @ W1 + (b_x + b_h)
    Xc = (jnp.dot(h, w_ref[ROW_W0X:ROW_W0X + F, :3 * F],
                  preferred_element_type=jnp.float32)
          + jnp.dot(Lh, w_ref[ROW_W1X:ROW_W1X + F, :3 * F],
                    preferred_element_type=jnp.float32)
          + w_ref[ROW_BGATE:ROW_BGATE + 1, :3 * F])            # (N, 3F)

    # h-path, z & r gates stacked: H @ W0 + (L@H) @ W1
    zr = (Xc[:, :2 * F]
          + jnp.dot(H, w_ref[ROW_W0ZR:ROW_W0ZR + F, :2 * F],
                    preferred_element_type=jnp.float32)
          + jnp.dot(LH, w_ref[ROW_W1ZR:ROW_W1ZR + F, :2 * F],
                    preferred_element_type=jnp.float32))
    zr = jax.nn.sigmoid(zr)                                    # (N, 2F)
    Z, R = zr[:, :F], zr[:, F:]

    # candidate state: ChebConv on H * R
    HR = H * R
    LHR = jnp.dot(lhat, HR, preferred_element_type=jnp.float32)
    H_tilde = jnp.tanh(
        Xc[:, 2 * F:]
        + jnp.dot(HR, w_ref[ROW_W0C:ROW_W0C + F, :F],
                  preferred_element_type=jnp.float32)
        + jnp.dot(LHR, w_ref[ROW_W1C:ROW_W1C + F, :F],
                  preferred_element_type=jnp.float32))

    H_new = Z * H + (1.0 - Z) * H_tilde     # GRU hidden state (h_state)
    h_next = jnp.tanh(H_new)                # activ_fun = tanh

    hid_scr[...] = H_new
    hin_scr[...] = h_next

    @pl.when(t == pl.num_programs(0) - 1)
    def _finalize():
        # readout on tanh(H_new) with lane-dense (F,128)-padded weight; both
        # output bands written with 128-lane-aligned stores.
        y = (jnp.dot(h_next, w_ref[ROW_WRO:ROW_WRO + F, :],
                     preferred_element_type=jnp.float32)
             + w_ref[ROW_BRO:ROW_BRO + 1, :])                  # (N, 128)
        out_ref[:, :LANES] = y
        out_ref[:, LANES:] = jnp.concatenate(
            [H_new, jnp.zeros((N_NODES, LANES - F), jnp.float32)], axis=1)


def build_lhat(edge_index, num_nodes):
    """get_laplacian(normalization=None) + ChebConv.__norm__ with
    lambda_max = edge_weight.max() (as in the reference forward).
    Hoisted out of the per-step forward: built once per static graph."""
    row, col = edge_index[0], edge_index[1]
    w = jnp.ones(row.shape[0], dtype=jnp.float32)
    A = jnp.zeros((num_nodes, num_nodes), jnp.float32).at[row, col].add(w)
    deg = jnp.zeros((num_nodes,), jnp.float32).at[row].add(w)
    L = jnp.diag(deg) - A
    # max over the unnormalized Laplacian's edge weights {-w, deg} = deg.max()
    lambda_max = jnp.maximum(jnp.max(deg), jnp.max(-w))
    return (2.0 / lambda_max) * L - jnp.eye(num_nodes, dtype=jnp.float32)


def init_params(key):
    ks = jax.random.split(key, 7)
    s = 0.1
    return dict(
        w_emb=s * jax.random.normal(ks[0], (INPUT_DIM, F), jnp.float32),
        b_emb=s * jax.random.normal(ks[1], (1, F), jnp.float32),
        # 6 ChebConvs in order (x_z, h_z, x_r, h_r, x_h, h_h): K=2 weights + bias
        w0=s * jax.random.normal(ks[2], (6, F, F), jnp.float32),
        w1=s * jax.random.normal(ks[3], (6, F, F), jnp.float32),
        bc=s * jax.random.normal(ks[4], (6, 1, F), jnp.float32),
        w_ro=s * jax.random.normal(ks[5], (F, OUTPUT_DIM), jnp.float32),
        b_ro=s * jax.random.normal(ks[6], (1, OUTPUT_DIM), jnp.float32),
    )


def pack_params(params):
    """Pack all parameters into ONE sublane-stacked (SLAB_ROWS, 128) f32 slab:
    Chebyshev weights kept as stacked T0/T1 halves (for the split-matmul form),
    x+h gate biases pre-summed, readout padded lane-dense."""
    w0, w1, bc = params["w0"], params["w1"], params["bc"]
    w0x = jnp.concatenate([w0[0], w0[2], w0[4]], axis=1)       # (F, 3F)
    w1x = jnp.concatenate([w1[0], w1[2], w1[4]], axis=1)       # (F, 3F)
    w0zr = jnp.concatenate([w0[1], w0[3]], axis=1)             # (F, 2F)
    w1zr = jnp.concatenate([w1[1], w1[3]], axis=1)             # (F, 2F)
    b_gate = jnp.concatenate([bc[0] + bc[1], bc[2] + bc[3], bc[4] + bc[5]],
                             axis=1)                           # (1, 3F)

    slab = jnp.zeros((SLAB_ROWS, LANES), jnp.float32)
    slab = slab.at[ROW_WEMB:ROW_WEMB + INPUT_DIM, :F].set(params["w_emb"])
    slab = slab.at[ROW_W0X:ROW_W0X + F, :3 * F].set(w0x)
    slab = slab.at[ROW_W1X:ROW_W1X + F, :3 * F].set(w1x)
    slab = slab.at[ROW_W0ZR:ROW_W0ZR + F, :2 * F].set(w0zr)
    slab = slab.at[ROW_W1ZR:ROW_W1ZR + F, :2 * F].set(w1zr)
    slab = slab.at[ROW_W0C:ROW_W0C + F, :F].set(w0[5])
    slab = slab.at[ROW_W1C:ROW_W1C + F, :F].set(w1[5])
    slab = slab.at[ROW_WRO:ROW_WRO + F, :OUTPUT_DIM].set(params["w_ro"])
    slab = slab.at[ROW_BEMB, :F].set(params["b_emb"][0])
    slab = slab.at[ROW_BGATE, :3 * F].set(b_gate[0])
    slab = slab.at[ROW_BRO, :OUTPUT_DIM].set(params["b_ro"][0])
    return slab


@partial(jax.jit, static_argnames=("delta_t",))
def gcrn_gru_forward(lhat, x, prev_h, wslab, delta_t=1):
    """Forward of GCRN_GRU_Model.  delta_t=1 == iterate=False (the spec default);
    delta_t>1 == iterate=True, with the recurrence amortized inside one
    pallas_call (grid=(delta_t,), state VMEM-resident across steps)."""
    n = x.shape[0]
    out = pl.pallas_call(
        gcrn_gru_kernel,
        out_shape=jax.ShapeDtypeStruct((n, 2 * LANES), jnp.float32),
        grid=(delta_t,),
        in_specs=[
            pl.BlockSpec((n, n), lambda t: (0, 0)),
            pl.BlockSpec((n, INPUT_DIM), lambda t: (0, 0)),
            pl.BlockSpec((n, HIDDEN_DIM), lambda t: (0, 0)),
            pl.BlockSpec((SLAB_ROWS, LANES), lambda t: (0, 0)),
        ],
        out_specs=pl.BlockSpec((n, 2 * LANES), lambda t: (0, 0)),
        scratch_shapes=[pltpu.VMEM((n, HIDDEN_DIM), jnp.float32),   # conv input h
                        pltpu.VMEM((n, HIDDEN_DIM), jnp.float32)],  # hidden H
        compiler_params=pltpu.CompilerParams(
            dimension_semantics=("arbitrary",)),
    )(lhat, x, prev_h, wslab)
    return out[:, :OUTPUT_DIM], out[:, LANES:LANES + HIDDEN_DIM]


def reference_forward(lhat, x, prev_h, params, delta_t):
    """Pure-JAX reference of the PyTorch forward (for correctness checking)."""
    w0, w1, bc = params["w0"], params["w1"], params["bc"]

    def cheb(i, inp):
        return inp @ w0[i] + (lhat @ inp) @ w1[i] + bc[i]

    h = x @ params["w_emb"] + params["b_emb"]
    H = prev_h
    for _ in range(delta_t):
        Z = jax.nn.sigmoid(cheb(0, h) + cheb(1, H))
        R = jax.nn.sigmoid(cheb(2, h) + cheb(3, H))
        H_tilde = jnp.tanh(cheb(4, h) + cheb(5, H * R))
        H = Z * H + (1.0 - Z) * H_tilde
        h = jnp.tanh(H)
    y = h @ params["w_ro"] + params["b_ro"]
    return y, H


if __name__ == "__main__":
    jax.config.update("jax_default_matmul_precision", "highest")

    key = jax.random.PRNGKey(0)
    kx, kp = jax.random.split(key)

    # Node features
    x = jax.random.normal(kx, (N_NODES, INPUT_DIM), jnp.float32)

    # Symmetric ring graph: edges (i, i+1) and (i+1, i)
    src = jnp.arange(N_NODES, dtype=jnp.int32)
    dst = (src + 1) % N_NODES
    edge_index = jnp.stack([jnp.concatenate([src, dst]),
                            jnp.concatenate([dst, src])], axis=0)

    # prev_h is None in the reference call -> GConvGRU uses a zero hidden state
    prev_h = jnp.zeros((N_NODES, HIDDEN_DIM), jnp.float32)

    params = init_params(kp)
    wslab = pack_params(params)               # once per model (single DMA slab)
    lhat = build_lhat(edge_index, N_NODES)    # once per static graph

    # iterate=False (spec default): delta_t forced to 1
    y, h_state = gcrn_gru_forward(lhat, x, prev_h, wslab, delta_t=1)
    jax.block_until_ready((y, h_state))
    y_ref, h_ref = reference_forward(lhat, x, prev_h, params, 1)
    assert y.shape == (N_NODES, OUTPUT_DIM) and h_state.shape == (N_NODES, HIDDEN_DIM)
    assert jnp.allclose(y, y_ref, atol=2e-3, rtol=2e-3)
    assert jnp.allclose(h_state, h_ref, atol=2e-3, rtol=2e-3)

    # iterate=True path: 4 recurrent steps amortized inside one pallas_call
    y4, h4 = gcrn_gru_forward(lhat, x, prev_h, wslab, delta_t=4)
    jax.block_until_ready((y4, h4))
    y4_ref, h4_ref = reference_forward(lhat, x, prev_h, params, 4)
    assert jnp.allclose(y4, y4_ref, atol=2e-3, rtol=2e-3)
    assert jnp.allclose(h4, h4_ref, atol=2e-3, rtol=2e-3)

    print("KERNEL_OK")
</pallas_src>

<mosaic_0001>
module attributes {stable_mosaic.version = 11 : i64} {
  func.func @gcrn_gru_kernel(%arg0: i32, %arg1: memref<16x16xf32, #tpu.memory_space<vmem>>, %arg2: memref<16x8xf32, #tpu.memory_space<vmem>>, %arg3: memref<16x32xf32, #tpu.memory_space<vmem>>, %arg4: memref<240x128xf32, #tpu.memory_space<vmem>>, %arg5: memref<16x256xf32, #tpu.memory_space<vmem>>, %arg6: memref<16x32xf32, #tpu.memory_space<vmem>>, %arg7: memref<16x32xf32, #tpu.memory_space<vmem>>) attributes {dimension_semantics = [#tpu.dimension_semantics<arbitrary>], iteration_bounds = array<i64: 1>, scalar_prefetch = 0 : i64, scratch_operands = 2 : i64, tpu.core_type = #tpu.core_type<tc>, window_params = [{pipeline_mode = #tpu.pipeline_mode<synchronous>, transform_indices = @transform_0, window_bounds = array<i64: 16, 16>}, {pipeline_mode = #tpu.pipeline_mode<synchronous>, transform_indices = @transform_1, window_bounds = array<i64: 16, 8>}, {pipeline_mode = #tpu.pipeline_mode<synchronous>, transform_indices = @transform_2, window_bounds = array<i64: 16, 32>}, {pipeline_mode = #tpu.pipeline_mode<synchronous>, transform_indices = @transform_3, window_bounds = array<i64: 240, 128>}, {pipeline_mode = #tpu.pipeline_mode<synchronous>, transform_indices = @transform_4, window_bounds = array<i64: 16, 256>}]} {
    %c0_i32 = arith.constant 0 : i32
    %0 = arith.cmpi eq, %arg0, %c0_i32 : i32
    %1 = arith.extui %0 : i1 to i32
    %c0_i32_0 = arith.constant 0 : i32
    %2 = arith.cmpi ne, %1, %c0_i32_0 : i32
    scf.if %2 {
      %c0_29 = arith.constant 0 : index
      %c0_30 = arith.constant 0 : index
      %51 = vector.load %arg2[%c0_29, %c0_30] : memref<16x8xf32, #tpu.memory_space<vmem>>, vector<16x8xf32>
      %c0_31 = arith.constant 0 : index
      %c0_32 = arith.constant 0 : index
      %52 = vector.load %arg4[%c0_31, %c0_32] : memref<240x128xf32, #tpu.memory_space<vmem>>, vector<8x32xf32>
      %cst_33 = arith.constant dense<0.000000e+00> : vector<16x32xf32>
      %53 = tpu.matmul %51, %52, %cst_33 {dimension_numbers = #tpu.dot_dimension_numbers<[1], [0], [0], [1], [0, 0, 1, 1], [], []>, precision = #tpu.contract_precision<fp32>} : vector<16x8xf32>, vector<8x32xf32>, vector<16x32xf32> -> vector<16x32xf32>
      %c232 = arith.constant 232 : index
      %c0_34 = arith.constant 0 : index
      %54 = vector.load %arg4[%c232, %c0_34] : memref<240x128xf32, #tpu.memory_space<vmem>>, vector<1x32xf32>
      %55 = vector.broadcast %54 : vector<1x32xf32> to vector<16x32xf32>
      %56 = arith.addf %53, %55 : vector<16x32xf32>
      %c0_35 = arith.constant 0 : index
      %c0_36 = arith.constant 0 : index
      %57 = vector.load %arg6[%c0_35, %c0_36] : memref<16x32xf32, #tpu.memory_space<vmem>>, vector<16x32xf32>
      tpu.vector_store %arg6[%c0_35, %c0_36], %56 {strides = array<i32>} : memref<16x32xf32, #tpu.memory_space<vmem>>, vector<16x32xf32>,
      %c0_37 = arith.constant 0 : index
      %c0_38 = arith.constant 0 : index
      %58 = vector.load %arg3[%c0_37, %c0_38] : memref<16x32xf32, #tpu.memory_space<vmem>>, vector<16x32xf32>
      %c0_39 = arith.constant 0 : index
      %c0_40 = arith.constant 0 : index
      %59 = vector.load %arg7[%c0_39, %c0_40] : memref<16x32xf32, #tpu.memory_space<vmem>>, vector<16x32xf32>
      tpu.vector_store %arg7[%c0_39, %c0_40], %58 {strides = array<i32>} : memref<16x32xf32, #tpu.memory_space<vmem>>, vector<16x32xf32>,
    } else {
    }
    %c0 = arith.constant 0 : index
    %c0_1 = arith.constant 0 : index
    %3 = vector.load %arg1[%c0, %c0_1] : memref<16x16xf32, #tpu.memory_space<vmem>>, vector<16x16xf32>
    %c0_2 = arith.constant 0 : index
    %c0_3 = arith.constant 0 : index
    %4 = vector.load %arg6[%c0_2, %c0_3] : memref<16x32xf32, #tpu.memory_space<vmem>>, vector<16x32xf32>
    %c0_4 = arith.constant 0 : index
    %c0_5 = arith.constant 0 : index
    %5 = vector.load %arg7[%c0_4, %c0_5] : memref<16x32xf32, #tpu.memory_space<vmem>>, vector<16x32xf32>
    %cst = arith.constant dense<0.000000e+00> : vector<16x32xf32>
    %6 = tpu.matmul %3, %4, %cst {dimension_numbers = #tpu.dot_dimension_numbers<[1], [0], [0], [1], [0, 0, 1, 1], [], []>, precision = #tpu.contract_precision<fp32>} : vector<16x16xf32>, vector<16x32xf32>, vector<16x32xf32> -> vector<16x32xf32>
    %cst_6 = arith.constant dense<0.000000e+00> : vector<16x32xf32>
    %7 = tpu.matmul %3, %5, %cst_6 {dimension_numbers = #tpu.dot_dimension_numbers<[1], [0], [0], [1], [0, 0, 1, 1], [], []>, precision = #tpu.contract_precision<fp32>} : vector<16x16xf32>, vector<16x32xf32>, vector<16x32xf32> -> vector<16x32xf32>
    %c8 = arith.constant 8 : index
    %c0_7 = arith.constant 0 : index
    %8 = vector.load %arg4[%c8, %c0_7] : memref<240x128xf32, #tpu.memory_space<vmem>>, vector<32x96xf32>
    %cst_8 = arith.constant dense<0.000000e+00> : vector<16x96xf32>
    %9 = tpu.matmul %4, %8, %cst_8 {dimension_numbers = #tpu.dot_dimension_numbers<[1], [0], [0], [1], [0, 0, 1, 1], [], []>, precision = #tpu.contract_precision<fp32>} : vector<16x32xf32>, vector<32x96xf32>, vector<16x96xf32> -> vector<16x96xf32>
    %c40 = arith.constant 40 : index
    %c0_9 = arith.constant 0 : index
    %10 = vector.load %arg4[%c40, %c0_9] : memref<240x128xf32, #tpu.memory_space<vmem>>, vector<32x96xf32>
    %cst_10 = arith.constant dense<0.000000e+00> : vector<16x96xf32>
    %11 = tpu.matmul %6, %10, %cst_10 {dimension_numbers = #tpu.dot_dimension_numbers<[1], [0], [0], [1], [0, 0, 1, 1], [], []>, precision = #tpu.contract_precision<fp32>} : vector<16x32xf32>, vector<32x96xf32>, vector<16x96xf32> -> vector<16x96xf32>
    %12 = arith.addf %9, %11 : vector<16x96xf32>
    %c233 = arith.constant 233 : index
    %c0_11 = arith.constant 0 : index
    %13 = vector.load %arg4[%c233, %c0_11] : memref<240x128xf32, #tpu.memory_space<vmem>>, vector<1x96xf32>
    %14 = vector.broadcast %13 : vector<1x96xf32> to vector<16x96xf32>
    %15 = arith.addf %12, %14 : vector<16x96xf32>
    %16 = vector.extract_strided_slice %15 {offsets = [0, 0], sizes = [16, 64], strides = [1, 1]} : vector<16x96xf32> to vector<16x64xf32>
    %c72 = arith.constant 72 : index
    %c0_12 = arith.constant 0 : index
    %17 = vector.load %arg4[%c72, %c0_12] : memref<240x128xf32, #tpu.memory_space<vmem>>, vector<32x64xf32>
    %cst_13 = arith.constant dense<0.000000e+00> : vector<16x64xf32>
    %18 = tpu.matmul %5, %17, %cst_13 {dimension_numbers = #tpu.dot_dimension_numbers<[1], [0], [0], [1], [0, 0, 1, 1], [], []>, precision = #tpu.contract_precision<fp32>} : vector<16x32xf32>, vector<32x64xf32>, vector<16x64xf32> -> vector<16x64xf32>
    %19 = arith.addf %16, %18 : vector<16x64xf32>
    %c104 = arith.constant 104 : index
    %c0_14 = arith.constant 0 : index
    %20 = vector.load %arg4[%c104, %c0_14] : memref<240x128xf32, #tpu.memory_space<vmem>>, vector<32x64xf32>
    %cst_15 = arith.constant dense<0.000000e+00> : vector<16x64xf32>
    %21 = tpu.matmul %7, %20, %cst_15 {dimension_numbers = #tpu.dot_dimension_numbers<[1], [0], [0], [1], [0, 0, 1, 1], [], []>, precision = #tpu.contract_precision<fp32>} : vector<16x32xf32>, vector<32x64xf32>, vector<16x64xf32> -> vector<16x64xf32>
    %22 = arith.addf %19, %21 : vector<16x64xf32>
    %23 = arith.negf %22 : vector<16x64xf32>
    %24 = math.exp %23 : vector<16x64xf32>
    %cst_16 = arith.constant 1.000000e+00 : f32
    %25 = vector.broadcast %cst_16 : f32 to vector<16x64xf32>
    %26 = arith.addf %25, %24 : vector<16x64xf32>
    %27 = arith.divf %25, %26 : vector<16x64xf32>
    %28 = vector.extract_strided_slice %27 {offsets = [0, 0], sizes = [16, 32], strides = [1, 1]} : vector<16x64xf32> to vector<16x32xf32>
    %29 = vector.extract_strided_slice %27 {offsets = [0, 32], sizes = [16, 32], strides = [1, 1]} : vector<16x64xf32> to vector<16x32xf32>
    %30 = arith.mulf %5, %29 : vector<16x32xf32>
    %cst_17 = arith.constant dense<0.000000e+00> : vector<16x32xf32>
    %31 = tpu.matmul %3, %30, %cst_17 {dimension_numbers = #tpu.dot_dimension_numbers<[1], [0], [0], [1], [0, 0, 1, 1], [], []>, precision = #tpu.contract_precision<fp32>} : vector<16x16xf32>, vector<16x32xf32>, vector<16x32xf32> -> vector<16x32xf32>
    %32 = vector.extract_strided_slice %15 {offsets = [0, 64], sizes = [16, 32], strides = [1, 1]} : vector<16x96xf32> to vector<16x32xf32>
    %c136 = arith.constant 136 : index
    %c0_18 = arith.constant 0 : index
    %33 = vector.load %arg4[%c136, %c0_18] : memref<240x128xf32, #tpu.memory_space<vmem>>, vector<32x32xf32>
    %cst_19 = arith.constant dense<0.000000e+00> : vector<16x32xf32>
    %34 = tpu.matmul %30, %33, %cst_19 {dimension_numbers = #tpu.dot_dimension_numbers<[1], [0], [0], [1], [0, 0, 1, 1], [], []>, precision = #tpu.contract_precision<fp32>} : vector<16x32xf32>, vector<32x32xf32>, vector<16x32xf32> -> vector<16x32xf32>
    %35 = arith.addf %32, %34 : vector<16x32xf32>
    %c168 = arith.constant 168 : index
    %c0_20 = arith.constant 0 : index
    %36 = vector.load %arg4[%c168, %c0_20] : memref<240x128xf32, #tpu.memory_space<vmem>>, vector<32x32xf32>
    %cst_21 = arith.constant dense<0.000000e+00> : vector<16x32xf32>
    %37 = tpu.matmul %31, %36, %cst_21 {dimension_numbers = #tpu.dot_dimension_numbers<[1], [0], [0], [1], [0, 0, 1, 1], [], []>, precision = #tpu.contract_precision<fp32>} : vector<16x32xf32>, vector<32x32xf32>, vector<16x32xf32> -> vector<16x32xf32>
    %38 = arith.addf %35, %37 : vector<16x32xf32>
    %39 = math.tanh %38 : vector<16x32xf32>
    %40 = arith.mulf %28, %5 : vector<16x32xf32>
    %cst_22 = arith.constant 1.000000e+00 : f32
    %41 = vector.broadcast %cst_22 : f32 to vector<16x32xf32>
    %42 = arith.subf %41, %28 : vector<16x32xf32>
    %43 = arith.mulf %42, %39 : vector<16x32xf32>
    %44 = arith.addf %40, %43 : vector<16x32xf32>
    %45 = math.tanh %44 : vector<16x32xf32>
    %c0_23 = arith.constant 0 : index
    %c0_24 = arith.constant 0 : index
    %46 = vector.load %arg7[%c0_23, %c0_24] : memref<16x32xf32, #tpu.memory_space<vmem>>, vector<16x32xf32>
    tpu.vector_store %arg7[%c0_23, %c0_24], %44 {strides = array<i32>} : memref<16x32xf32, #tpu.memory_space<vmem>>, vector<16x32xf32>,
    %c0_25 = arith.constant 0 : index
    %c0_26 = arith.constant 0 : index
    %47 = vector.load %arg6[%c0_25, %c0_26] : memref<16x32xf32, #tpu.memory_space<vmem>>, vector<16x32xf32>
    tpu.vector_store %arg6[%c0_25, %c0_26], %45 {strides = array<i32>} : memref<16x32xf32, #tpu.memory_space<vmem>>, vector<16x32xf32>,
    %c0_i32_27 = arith.constant 0 : i32
    %48 = arith.cmpi eq, %arg0, %c0_i32_27 : i32
    %49 = arith.extui %48 : i1 to i32
    %c0_i32_28 = arith.constant 0 : i32
    %50 = arith.cmpi ne, %49, %c0_i32_28 : i32
    scf.if %50 {
      %c200 = arith.constant 200 : index
      %c0_29 = arith.constant 0 : index
      %51 = vector.load %arg4[%c200, %c0_29] : memref<240x128xf32, #tpu.memory_space<vmem>>, vector<32x128xf32>
      %cst_30 = arith.constant dense<0.000000e+00> : vector<16x128xf32>
      %52 = tpu.matmul %45, %51, %cst_30 {dimension_numbers = #tpu.dot_dimension_numbers<[1], [0], [0], [1], [0, 0, 1, 1], [], []>, precision = #tpu.contract_precision<fp32>} : vector<16x32xf32>, vector<32x128xf32>, vector<16x128xf32> -> vector<16x128xf32>
      %c234 = arith.constant 234 : index
      %c0_31 = arith.constant 0 : index
      %53 = vector.load %arg4[%c234, %c0_31] : memref<240x128xf32, #tpu.memory_space<vmem>>, vector<1x128xf32>
      %54 = vector.broadcast %53 : vector<1x128xf32> to vector<16x128xf32>
      %55 = arith.addf %52, %54 : vector<16x128xf32>
      %c0_32 = arith.constant 0 : index
      %c0_33 = arith.constant 0 : index
      %56 = vector.load %arg5[%c0_32, %c0_33] : memref<16x256xf32, #tpu.memory_space<vmem>>, vector<16x128xf32>
      tpu.vector_store %arg5[%c0_32, %c0_33], %55 {strides = array<i32>} : memref<16x256xf32, #tpu.memory_space<vmem>>, vector<16x128xf32>,
      %cst_34 = arith.constant 0.000000e+00 : f32
      %57 = vector.broadcast %cst_34 : f32 to vector<16x96xf32>
      %58 = tpu.concatenate %44, %57 in 1 : vector<16x32xf32>, vector<16x96xf32> -> vector<16x128xf32>
      %c0_35 = arith.constant 0 : index
      %c128 = arith.constant 128 : index
      %59 = vector.load %arg5[%c0_35, %c128] : memref<16x256xf32, #tpu.memory_space<vmem>>, vector<16x128xf32>
      tpu.vector_store %arg5[%c0_35, %c128], %58 {strides = array<i32>} : memref<16x256xf32, #tpu.memory_space<vmem>>, vector<16x128xf32>,
    } else {
    }
    return
  }
  func.func @transform_0(%arg0: i32) -> (i32, i32) {
    %c0_i32 = arith.constant 0 : i32
    %c0_i32_0 = arith.constant 0 : i32
    %c0_i32_1 = arith.constant 0 : i32
    return %c0_i32, %c0_i32_0 : i32, i32
  }
  func.func @transform_1(%arg0: i32) -> (i32, i32) {
    %c0_i32 = arith.constant 0 : i32
    %c0_i32_0 = arith.constant 0 : i32
    %c0_i32_1 = arith.constant 0 : i32
    return %c0_i32, %c0_i32_0 : i32, i32
  }
  func.func @transform_2(%arg0: i32) -> (i32, i32) {
    %c0_i32 = arith.constant 0 : i32
    %c0_i32_0 = arith.constant 0 : i32
    %c0_i32_1 = arith.constant 0 : i32
    return %c0_i32, %c0_i32_0 : i32, i32
  }
  func.func @transform_3(%arg0: i32) -> (i32, i32) {
    %c0_i32 = arith.constant 0 : i32
    %c0_i32_0 = arith.constant 0 : i32
    %c0_i32_1 = arith.constant 0 : i32
    return %c0_i32, %c0_i32_0 : i32, i32
  }
  func.func @transform_4(%arg0: i32) -> (i32, i32) {
    %c0_i32 = arith.constant 0 : i32
    %c0_i32_0 = arith.constant 0 : i32
    %c0_i32_1 = arith.constant 0 : i32
    return %c0_i32, %c0_i32_0 : i32, i32
  }
}

</mosaic_0001>

<bundles_post_ra>
// kernel: gcrn_gru_forward.1
= control target key start
LH: loop header
LB: loop body
LE: loop exit
PB: predicated region body
PF: predicated region fallthrough
CT: control target
= control target key end

     0   :  { %9 = vsyncpa [#allocation5], 0  ;;  %s3088_s0 = inlined_call_operand.vmem [shape: f32[16,16], index: 0, kind: input, shape index: {}]   ;;  %s3089_s1 = inlined_call_operand.vmem [shape: f32[16,8], index: 1, kind: input, shape index: {}]   ;;  %s3090_s2 = inlined_call_operand.hbm [shape: f32[16,32], index: 2, kind: input, shape index: {}]   ;;  %s3091_s3 = inlined_call_operand.hbm [shape: f32[240,128], index: 3, kind: input, shape index: {}]   ;;  %s3092_s4 = inlined_call_operand.vmem [shape: f32[16,256], index: 4, kind: output, shape index: {}]  }
   0x1   :  { %s19_s17 = sshll.u32 %s3090_s2, 4  ;;  %s20_s17 = int_to_ptr.hbm [resolvable:$true] %s19_s17 }
   0x2   :  { %10 = vsyncpa [#allocation7], 0  ;;  %s2615_s18 = smov [#allocation4]   ;;  %s32_s22 = sshll.u32 %s3091_s3, 4  ;;  %s33_s22 = int_to_ptr.hbm [resolvable:$true] %s32_s22 }
   0x3   :  { %s21_s19 = sshll.u32 %s2615_s18, 4  ;;  %s2616_s23 = smov 128   ;;  %s22_s19 = int_to_ptr.vmem [resolvable:$true] %s21_s19 }
   0x4   :  { %s2617_s24 = smov 8   ;;  %s2618_s25 = smov [#allocation6]  }
   0x5   :  { %27 = dma.hbm_to_vmem [thread:$0]  %s20_s17, 256, %s22_s19, [#allocation5], %s2616_s23, %s2616_s23, %s2617_s24  }
   0x6   :  { %s34_s26 = sshll.u32 %s2618_s25, 4  ;;  %s35_s26 = int_to_ptr.vmem [resolvable:$true] %s34_s26 }
   0x7   :  { %40 = dma.hbm_to_vmem [thread:$0]  %s33_s22, 3840, %s35_s26, [#allocation7], %s2616_s23, %s2616_s23, %s2617_s24  }
   0x8   :  { %2611 = dma.done.wait [#allocation5], 256  }
   0x9   :  { %2612 = vsyncadd [#allocation5], 4294967040 }
   0xa   :  { %2613 = dma.done.wait [#allocation7], 3840  }
   0xb   :  { %2614 = vsyncadd [#allocation7], 4294963456  ;;  %vm58_vm0 = vcmask 64512   ;;  %v55_v0 = vld [vmem:[#allocation6] sm:$0xff]  ;;  %v54_v1 = vld [vmem:[%s3089_s1 + $0x8] sm:$0xff]  ;;  %vm255_vm1 = vcmask 130048  }
   0xc   :  { %v53_v2 = vld [vmem:[%s3089_s1] sm:$0xff]  ;;  %v80_v3 = vand.u32 4294901760, %v55_v0  ;;  %v63_v4 = vsel %vm58_vm0, %v54_v1, 0  ;;  %v2542_v21 = vld [vmem:[#allocation6 + $0xe8] ss:$0 sm:$0xff]  ;;  %vm242_vm2 = vcmask 261120  }
   0xd   :  { %v60_v5 = vsel %vm58_vm0, %v53_v2, 0  ;;  %v90_v6 = vand.u32 4294901760, %v63_v4  ;;  %v249_v34 = vld [vmem:[%s3088_s0] sm:$0xff]  ;;  %v250_v46 = vld [vmem:[%s3088_s0 + $0x8] sm:$0xff]  ;;  %s2619_s0 = smov 96   ;;  %s2620_s6 = smov 64  }
   0xe   :  { %v82_v7 = vand.u32 4294901760, %v60_v5  ;;  %2534 = vmatpush.msra.mxu2 %v80_v3  ;;  %v115_v8 = vsub.f32 %v55_v0, %v80_v3  ;;  %81 = vmatpush.msra.mxu0 %v80_v3  ;;  %v257_v38 = vsel %vm255_vm1, %v249_v34, 0  ;;  %v260_v50 = vsel %vm255_vm1, %v250_v46, 0  ;;  %v246_v2 = vld [vmem:[#allocation4 + $0x8] sm:$0xff] }
   0xf   :  { %v91_v9 = vsub.f32 %v63_v4, %v90_v6  ;;  %v2663_v43 = vand.u32 4294901760, %v257_v38  ;;  %v2678_v53 = vand.u32 4294901760, %v260_v50  ;;  %248 = vst.msk [vmem:[#allocation3 + $0x8] sm:$0xff] %vm242_vm2, %v246_v2 }
  0x10   :  { %v83_v10 = vsub.f32 %v60_v5, %v82_v7  ;;  %v116_v11 = vand.u32 4294901760, %v115_v8  ;;  %146 = vmatpush.msrb.mxu2 %v115_v8 }
  0x11   :  { %v92_v12 = vand.u32 4294901760, %v91_v9  ;;  %v2669_v48 = vsub.f32 %v257_v38, %v2663_v43  ;;  %v2684_v56 = vsub.f32 %v260_v50, %v2678_v53  ;;  %v644_v50 = vld [vmem:[#allocation6 + $0x18] sm:$0xff] }
  0x12   :  { %v84_v13 = vand.u32 4294901760, %v83_v10  ;;  %v117_v14 = vsub.f32 %v115_v8, %v116_v11  ;;  %206 = vmatpush.msrb.mxu0 %v116_v11 }
  0x13   :  { %v93_v15 = vsub.f32 %v91_v9, %v92_v12  ;;  %v2676_v52 = vand.u32 4294901760, %v2669_v48  ;;  %v2693_v61 = vand.u32 4294901760, %v2684_v56 }
  0x14   :  { %v85_v16 = vsub.f32 %v83_v10, %v84_v13  ;;  %v118_v17 = vand.u32 4294901760, %v117_v14 }
  0x15   :  { %v94_v18 = vand.u32 4294901760, %v93_v15  ;;  %v283_v55 = vsub.f32 %v2669_v48, %v2676_v52  ;;  %v291_v1 = vsub.f32 %v2684_v56, %v2693_v61 }
  0x16   :  { %v86_v19 = vand.u32 4294901760, %v85_v16  ;;  %2535 = vmatpush.msra.mxu3 %v118_v17  ;;  %119 = vmatpush.msra.mxu1 %v118_v17 }
  0x17   :  { %95 = vmatmul.f32.vlgmr.msra.gmra.mxu2 %v94_v18  ;;  %125 = vmatmul.f32.vlgmr.msra.gmra.mxu3 %v90_v6  ;;  %v2690_v60 = vand.u32 4294901760, %v283_v55  ;;  %v2740_v55 = vand.u32 4294901760, %v644_v50 }
  0x18   :  { %174 = vmatpush.msrb.mxu3 %v80_v3  ;;  %87 = vmatmul.f32.vlgmr.msra.gmra.mxu0 %v86_v19 }
  0x19   :  { %121 = vmatmul.f32.vlgmr.msra.gmra.mxu1 %v82_v7 }
  0x1a   :  { %232 = vmatpush.msrb.mxu1 %v80_v3  ;;  %v245_v3 = vld [vmem:[#allocation4] sm:$0xff] }
  0x1b   :  { %247 = vst.msk [vmem:[#allocation3] sm:$0xff] %vm242_vm2, %v245_v3 }
  0x1f   :  { %149 = vmatmul.f32.vlgmr.msrb.gmra.mxu2 %v83_v10  ;;  %178 = vmatmul.f32.vlgmr.msrb.gmra.mxu3 %v84_v13 }
  0x20   :  { %208 = vmatmul.f32.vlgmr.msrb.gmra.mxu0 %v82_v7 }
  0x21   :  { %234 = vmatmul.f32.vlgmr.msrb.gmra.mxu1 %v82_v7  ;;  %v2703_v7 = vand.u32 4294901760, %v291_v1 }
  0x22   :  { %v2710_v11 = vld [vmem:[#allocation3] sm:$0xff] }
  0x27   :  { %154 = vmatmul.f32.gmra.mxu2 %v91_v9  ;;  %184 = vmatmul.f32.gmra.mxu3 %v92_v12  ;;  %v2707_v9 = vld [vmem:[#allocation3 + $0x8] sm:$0xff]  ;;  %v468_v12 = vand.u32 4294901760, %v2710_v11 }
  0x28   :  { %212 = vmatmul.f32.gmra.mxu0 %v90_v6  ;;  %v466_v10 = vand.u32 4294901760, %v2707_v9 }
  0x29   :  { %238 = vmatmul.f32.gmra.mxu1 %v90_v6  ;;  %v508_v14 = vsub.f32 %v2710_v11, %v468_v12 }
  0x2a   :  { %v502_v13 = vsub.f32 %v2707_v9, %v466_v10 }
  0x2b   :  { %v509_v16 = vand.u32 4294901760, %v508_v14 }
  0x2c   :  { %v503_v15 = vand.u32 4294901760, %v502_v13 }
  0x2d   :  { %v510_v18 = vsub.f32 %v508_v14, %v509_v16 }
  0x2e   :  { %v504_v17 = vsub.f32 %v502_v13, %v503_v15 }
  0x30   :  { %v505_v19 = vand.u32 4294901760, %v504_v17 }
  0x95   :  { %v88_v20 = vpop.f32.mrf.mxu0 }
  0x96   :  { %v122_v22 = vpop.f32.mrf.mxu1  ;;  %v89_v25 = vadd.f32 %v2542_v21, %v88_v20  ;;  %v511_v20 = vand.u32 4294901760, %v510_v18 }
  0x98   :  { %v123_v26 = vadd.f32 %v122_v22, %v89_v25 }
  0x9a   :  { %v96_v23 = vpop.f32.mrf.mxu2  ;;  %v126_v24 = vpop.f32.mrf.mxu3 }
  0x9b   :  { %v97_v32 = vadd.f32 %v2542_v21, %v96_v23  ;;  %v649_v21 = vld [vmem:[#allocation6 + $0x40] sm:$0xff]  ;;  %v648_v23 = vld [vmem:[#allocation6 + $0x38] sm:$0xff] }
  0x9c   :  { %v669_v22 = vand.u32 4294901760, %v649_v21  ;;  %v671_v25 = vand.u32 4294901760, %v648_v23 }
  0x9d   :  { %v209_v27 = vpop.f32.mrf.mxu0  ;;  %v127_v36 = vadd.f32 %v126_v24, %v97_v32 }
  0x9e   :  { %v235_v31 = vpop.f32.mrf.mxu1  ;;  %v707_v24 = vsub.f32 %v649_v21, %v669_v22 }
  0xa2   :  { %v150_v28 = vpop.f32.mrf.mxu2  ;;  %v179_v29 = vpop.f32.mrf.mxu3 }
  0xa3   :  { %v151_v30 = vadd.f32 %v150_v28, %v123_v26  ;;  %v647_v26 = vld [vmem:[#allocation6 + $0x30] sm:$0xff]  ;;  %v713_v28 = vsub.f32 %v648_v23, %v671_v25 }
  0xa5   :  { %v180_v33 = vadd.f32 %v179_v29, %v151_v30  ;;  %v213_v42 = vpop.f32.mrf.mxu0  ;;  %v673_v29 = vand.u32 4294901760, %v647_v26  ;;  %v646_v30 = vld [vmem:[#allocation6 + $0x28] sm:$0xff]  ;;  %v714_v32 = vand.u32 4294901760, %v713_v28 }
  0xa6   :  { %v239_v45 = vpop.f32.mrf.mxu1  ;;  %v675_v34 = vand.u32 4294901760, %v646_v30 }
  0xa7   :  { %v210_v35 = vadd.f32 %v209_v27, %v180_v33  ;;  %v708_v27 = vand.u32 4294901760, %v707_v24  ;;  %v719_v33 = vsub.f32 %v647_v26, %v673_v29 }
  0xa8   :  { %v725_v38 = vsub.f32 %v646_v30, %v675_v34 }
  0xa9   :  { %v236_v37 = vadd.f32 %v235_v31, %v210_v35  ;;  %v709_v31 = vsub.f32 %v707_v24, %v708_v27 }
  0xaa   :  { %v155_v39 = vpop.f32.mrf.mxu2  ;;  %v185_v40 = vpop.f32.mrf.mxu3 }
  0xab   :  { %243 = vst.msk [vmem:[#allocation2] sm:$0xff] %vm242_vm2, %v236_v37  ;;  %v156_v41 = vadd.f32 %v155_v39, %v127_v36  ;;  %v710_v35 = vand.u32 4294901760, %v709_v31  ;;  %v715_v36 = vsub.f32 %v713_v28, %v714_v32  ;;  %v720_v37 = vand.u32 4294901760, %v719_v33 }
  0xad   :  { %v186_v44 = vadd.f32 %v185_v40, %v156_v41  ;;  %v716_v39 = vand.u32 4294901760, %v715_v36  ;;  %v721_v40 = vsub.f32 %v719_v33, %v720_v37  ;;  %v726_v41 = vand.u32 4294901760, %v725_v38 }
  0xaf   :  { %v214_v47 = vadd.f32 %v213_v42, %v186_v44  ;;  %v722_v42 = vand.u32 4294901760, %v721_v40  ;;  %v727_v44 = vsub.f32 %v725_v38, %v726_v41 }
  0xb1   :  { %v240_v49 = vadd.f32 %v239_v45, %v214_v47  ;;  %v728_v45 = vand.u32 4294901760, %v727_v44  ;;  %v645_v47 = vld [vmem:[#allocation6 + $0x20] sm:$0xff] }
  0xb2   :  { %v2672_v51 = vld [vmem:[#allocation2] sm:$0xff] }
  0xb3   :  { %244 = vst.msk [vmem:[#allocation2 + $0x8] sm:$0xff] %vm242_vm2, %v240_v49  ;;  %v278_v54 = vand.u32 4294901760, %v2672_v51  ;;  %v2734_v49 = vand.u32 4294901760, %v645_v47 }
  0xb5   :  { %v318_v57 = vsub.f32 %v2672_v51, %v278_v54 }
  0xb7   :  { %v319_v63 = vand.u32 4294901760, %v318_v57 }
  0xb9   :  { %v320_v5 = vsub.f32 %v318_v57, %v319_v63 }
  0xba   :  { %v2687_v58 = vld [vmem:[#allocation2 + $0x8] sm:$0xff] }
  0xbb   :  { %v276_v59 = vand.u32 4294901760, %v2687_v58  ;;  %v321_v8 = vand.u32 4294901760, %v320_v5 }
  0xbd   :  { %277 = vmatpush.msra.mxu2 %v276_v59  ;;  %378 = vmatpush.msra.mxu1 %v276_v59  ;;  %v312_v62 = vsub.f32 %v2687_v58, %v276_v59 }
  0xbf   :  { %279 = vmatpush.msra.mxu2 %v278_v54  ;;  %348 = vmatpush.msra.mxu0 %v312_v62  ;;  %v313_v0 = vand.u32 4294901760, %v312_v62 }
  0xc0   :  { %380 = vmatpush.msra.mxu1 %v278_v54  ;;  %285 = vmatmul.f32.vlgmr.msra.gmra.mxu2 %v2690_v60 }
  0xc1   :  { %351 = vmatpush.msra.mxu0 %v318_v57  ;;  %411 = vmatpush.msrb.mxu2 %v313_v0  ;;  %v314_v4 = vsub.f32 %v312_v62, %v313_v0  ;;  %v643_v57 = vld [vmem:[#allocation6 + $0x10] sm:$0xff]  ;;  %v642_v0 = vld [vmem:[#allocation6 + $0x8] sm:$0xff] }
  0xc2   :  { %354 = vmatmul.f32.vlgmr.msra.gmra.mxu0 %v2669_v48  ;;  %384 = vmatmul.f32.vlgmr.msra.gmra.mxu1 %v2676_v52  ;;  %v2744_v62 = vand.u32 4294901760, %v643_v57  ;;  %v2752_v5 = vand.u32 4294901760, %v642_v0 }
  0xc3   :  { %415 = vmatpush.msrb.mxu2 %v319_v63  ;;  %v315_v6 = vand.u32 4294901760, %v314_v4  ;;  %467 = vmatpush.msrb.mxu0 %v466_v10  ;;  %v2747_v63 = vsub.f32 %v644_v50, %v2740_v55 }
  0xc4   :  { %506 = vmatpush.msrb.mxu1 %v505_v19 }
  0xc5   :  { %316 = vmatpush.msra.mxu3 %v315_v6  ;;  %469 = vmatpush.msrb.mxu0 %v468_v12  ;;  %v936_v4 = vand.u32 4294901760, %v2747_v63  ;;  %v2755_v6 = vsub.f32 %v643_v57, %v2744_v62 }
  0xc6   :  { %538 = vmatpush.msra.mxu2 %v502_v13  ;;  %512 = vmatpush.msrb.mxu1 %v511_v20  ;;  %v2761_v13 = vsub.f32 %v642_v0, %v2752_v5  ;;  %v1100_v0 = vld [vmem:[#allocation6 + $0x50] sm:$0xff] }
  0xc7   :  { %322 = vmatpush.msra.mxu3 %v321_v8  ;;  %601 = vmatpush.msra.mxu0 %v503_v15 }
  0xc8   :  { %324 = vmatmul.f32.vlgmr.msra.gmra.mxu3 %v2663_v43  ;;  %293 = vmatmul.f32.gmra.mxu2 %v2703_v7  ;;  %v948_v17 = vand.u32 4294901760, %v2761_v13 }
  0xc9   :  { %440 = vmatpush.msrb.mxu3 %v276_v59  ;;  %541 = vmatpush.msra.mxu2 %v508_v14 }
  0xca   :  { %359 = vmatmul.f32.gmra.mxu0 %v2684_v56  ;;  %390 = vmatmul.f32.gmra.mxu1 %v2693_v61  ;;  %v949_v20 = vsub.f32 %v2761_v13, %v948_v17 }
  0xcb   :  { %442 = vmatpush.msrb.mxu3 %v278_v54  ;;  %605 = vmatpush.msra.mxu0 %v509_v16  ;;  %v2738_v54 = vsub.f32 %v645_v47, %v2734_v49 }
  0xcc   :  { %630 = vmatpush.msra.mxu1 %v466_v10  ;;  %v950_v23 = vand.u32 4294901760, %v949_v20 }
  0xcd   :  { %568 = vmatpush.msra.mxu3 %v466_v10  ;;  %v930_v59 = vand.u32 4294901760, %v2738_v54  ;;  %v937_v10 = vsub.f32 %v2747_v63, %v936_v4 }
  0xce   :  { %632 = vmatpush.msra.mxu1 %v468_v12 }
  0xcf   :  { %570 = vmatpush.msra.mxu3 %v468_v12  ;;  %v931_v3 = vsub.f32 %v2738_v54, %v930_v59  ;;  %v942_v12 = vand.u32 4294901760, %v2755_v6  ;;  %v938_v15 = vand.u32 4294901760, %v937_v10 }
  0xd0   :  { %328 = vmatmul.f32.gmra.mxu3 %v2678_v53  ;;  %417 = vmatmul.f32.vlgmr.msrb.gmra.mxu2 %v2663_v43 }
  0xd1   :  { %670 = vmatpush.msrb.mxu2 %v669_v22  ;;  %v932_v8 = vand.u32 4294901760, %v931_v3  ;;  %v943_v16 = vsub.f32 %v2755_v6, %v942_v12 }
  0xd2   :  { %475 = vmatmul.f32.vlgmr.msrb.gmra.mxu0 %v2690_v60  ;;  %514 = vmatmul.f32.vlgmr.msrb.gmra.mxu1 %v2663_v43 }
  0xd3   :  { %787 = vmatpush.msrb.mxu1 %v669_v22  ;;  %753 = vmatpush.msrb.mxu0 %v707_v24  ;;  %v944_v19 = vand.u32 4294901760, %v943_v16 }
  0xd4   :  { %672 = vmatpush.msrb.mxu2 %v671_v25 }
  0xd5   :  { %789 = vmatpush.msrb.mxu1 %v671_v25  ;;  %756 = vmatpush.msrb.mxu0 %v713_v28 }
  0xd6   :  { %674 = vmatpush.msrb.mxu2 %v673_v29 }
  0xd7   :  { %791 = vmatpush.msrb.mxu1 %v673_v29  ;;  %759 = vmatpush.msrb.mxu0 %v719_v33 }
  0xd8   :  { %444 = vmatmul.f32.vlgmr.msrb.gmra.mxu3 %v2663_v43  ;;  %421 = vmatmul.f32.gmra.mxu2 %v2678_v53 }
  0xd9   :  { %793 = vmatpush.msrb.mxu1 %v675_v34  ;;  %676 = vmatpush.msrb.mxu2 %v675_v34 }
  0xda   :  { %483 = vmatmul.f32.gmra.mxu0 %v2703_v7  ;;  %518 = vmatmul.f32.gmra.mxu1 %v2678_v53 }
  0xdb   :  { %711 = vmatpush.msrb.mxu3 %v710_v35  ;;  %762 = vmatpush.msrb.mxu0 %v725_v38  ;;  %v874_v35 = vsel %vm242_vm2, %v2672_v51, 0 }
  0xdd   :  { %717 = vmatpush.msrb.mxu3 %v716_v39  ;;  %v1102_v39 = vld [vmem:[#allocation6 + $0x60] sm:$0xff] }
  0xdf   :  { %723 = vmatpush.msrb.mxu3 %v722_v42  ;;  %v2777_v42 = vand.u32 4294901760, %v1102_v39 }
  0xe0   :  { %448 = vmatmul.f32.gmra.mxu3 %v2678_v53  ;;  %544 = vmatmul.f32.vlgmr.msra.gmra.mxu2 %v2669_v48 }
  0xe1   :  { %822 = vmatpush.msra.mxu2 %v708_v27  ;;  %729 = vmatpush.msrb.mxu3 %v728_v45  ;;  %v1101_v45 = vld [vmem:[#allocation6 + $0x58] sm:$0xff]  ;;  %v2781_v47 = vsub.f32 %v1102_v39, %v2777_v42 }
  0xe2   :  { %607 = vmatmul.f32.vlgmr.msra.gmra.mxu0 %v2663_v43  ;;  %634 = vmatmul.f32.vlgmr.msra.gmra.mxu1 %v2663_v43  ;;  %v2783_v50 = vand.u32 4294901760, %v1101_v45 }
  0xe3   :  { %826 = vmatpush.msra.mxu2 %v714_v32  ;;  %892 = vmatpush.msra.mxu0 %v2734_v49 }
  0xe4   :  { %933 = vmatpush.msra.mxu1 %v932_v8  ;;  %v2790_v3 = vsub.f32 %v1101_v45, %v2783_v50  ;;  %v2792_v8 = vand.u32 4294901760, %v1100_v0 }
  0xe5   :  { %830 = vmatpush.msra.mxu2 %v720_v37  ;;  %894 = vmatpush.msra.mxu0 %v2740_v55 }
  0xe6   :  { %939 = vmatpush.msra.mxu1 %v938_v15  ;;  %v1099_v15 = vld [vmem:[#allocation6 + $0x48] sm:$0xff]  ;;  %v2805_v20 = vsub.f32 %v1100_v0, %v2792_v8 }
  0xe7   :  { %834 = vmatpush.msra.mxu2 %v726_v41  ;;  %896 = vmatpush.msra.mxu0 %v2744_v62  ;;  %v2775_v41 = vand.u32 4294901760, %v874_v35 }
  0xe8   :  { %574 = vmatmul.f32.vlgmr.msra.gmra.mxu3 %v2676_v52  ;;  %549 = vmatmul.f32.gmra.mxu2 %v2684_v56 }
  0xe9   :  { %857 = vmatpush.msra.mxu3 %v669_v22  ;;  %898 = vmatpush.msra.mxu0 %v2752_v5 }
  0xea   :  { %611 = vmatmul.f32.gmra.mxu0 %v2678_v53  ;;  %638 = vmatmul.f32.gmra.mxu1 %v2678_v53 }
  0xeb   :  { %859 = vmatpush.msra.mxu3 %v671_v25  ;;  %945 = vmatpush.msra.mxu1 %v944_v19  ;;  %v1166_v19 = vand.u32 4294901760, %v2790_v3 }
  0xed   :  { %861 = vmatpush.msra.mxu3 %v673_v29  ;;  %951 = vmatpush.msra.mxu1 %v950_v23 }
  0xef   :  { %863 = vmatpush.msra.mxu3 %v675_v34 }
  0xf0   :  { %580 = vmatmul.f32.gmra.mxu3 %v2693_v61 }
 0x13f   :  { %v355_v14 = vpop.f32.mrf.mxu0  ;;  %v385_v22 = vpop.f32.mrf.mxu1 }
 0x143   :  { %v286_v46 = vpop.f32.mrf.mxu2 }
 0x147   :  { %v360_v28 = vpop.f32.mrf.mxu0  ;;  %v391_v33 = vpop.f32.mrf.mxu1 }
 0x14b   :  { %v325_v1 = vpop.f32.mrf.mxu3  ;;  %v294_v2 = vpop.f32.mrf.mxu2 }
 0x14c   :  { %v326_v18 = vadd.f32 %v325_v1, %v286_v46 }
 0x14e   :  { %v356_v24 = vadd.f32 %v355_v14, %v326_v18  ;;  %v877_v14 = vsel %vm242_vm2, %v2687_v58, 0  ;;  %v2807_v58 = vand.u32 4294901760, %v1099_v15 }
 0x150   :  { %v386_v27 = vadd.f32 %v385_v22, %v356_v24  ;;  %v2812_v22 = vand.u32 4294901760, %v877_v14  ;;  %v2821_v23 = vsub.f32 %v1099_v15, %v2807_v58 }
 0x153   :  { %v329_v21 = vpop.f32.mrf.mxu3  ;;  %v418_v25 = vpop.f32.mrf.mxu2 }
 0x154   :  { %v330_v26 = vadd.f32 %v329_v21, %v294_v2  ;;  %v419_v29 = vadd.f32 %v418_v25, %v386_v27  ;;  %v2787_v2 = vsub.f32 %v874_v35, %v2775_v41  ;;  %v476_v25 = vpop.f32.mrf.mxu0 }
 0x156   :  { %v361_v31 = vadd.f32 %v360_v28, %v330_v26  ;;  %v901_v21 = vand.u32 4294901760, %v2787_v2  ;;  %v2834_v28 = vsub.f32 %v877_v14, %v2812_v22 }
 0x158   :  { %v392_v38 = vadd.f32 %v391_v33, %v361_v31  ;;  %v902_v27 = vsub.f32 %v2787_v2, %v901_v21 }
 0x15b   :  { %v445_v30 = vpop.f32.mrf.mxu3  ;;  %v422_v37 = vpop.f32.mrf.mxu2 }
 0x15c   :  { %v446_v32 = vadd.f32 %v445_v30, %v419_v29  ;;  %v423_v44 = vadd.f32 %v422_v37, %v392_v38  ;;  %v515_v30 = vpop.f32.mrf.mxu1  ;;  %v484_v37 = vpop.f32.mrf.mxu0 }
 0x15d   :  { %v516_v45 = vadd.f32 %v515_v30, %v476_v25 }
 0x15e   :  { %v652_v34 = vsel %vm242_vm2, %v446_v32, 0 }
 0x15f   :  { %v2771_v36 = vand.u32 4294901760, %v652_v34 }
 0x161   :  { %v678_v40 = vsub.f32 %v652_v34, %v2771_v36  ;;  %731 = vmatmul.f32.vlgmr.msrb.gmra.mxu3 %v2771_v36  ;;  %v1330_v34 = vld [vmem:[#allocation6 + $0x80] sm:$0xff] }
 0x162   :  { %1009 = vmatpush.msrb.mxu3 %v2734_v49  ;;  %v2853_v38 = vand.u32 4294901760, %v1330_v34 }
 0x163   :  { %v449_v46 = vpop.f32.mrf.mxu3  ;;  %765 = vmatmul.f32.vlgmr.msrb.gmra.mxu0 %v678_v40  ;;  %v679_v51 = vand.u32 4294901760, %v678_v40  ;;  %v545_v39 = vpop.f32.mrf.mxu2 }
 0x164   :  { %v450_v57 = vadd.f32 %v449_v46, %v423_v44  ;;  %1011 = vmatpush.msrb.mxu3 %v2740_v55  ;;  %1044 = vmatpush.msrb.mxu0 %v930_v59  ;;  %v1160_v59 = vand.u32 4294901760, %v2781_v47  ;;  %v1328_v46 = vld [vmem:[#allocation6 + $0x70] sm:$0xff]  ;;  %v608_v25 = vpop.f32.mrf.mxu0 }
 0x165   :  { %797 = vmatmul.f32.vlgmr.msrb.gmra.mxu1 %v679_v51  ;;  %v680_v1 = vsub.f32 %v678_v40, %v679_v51  ;;  %v2858_v40 = vsub.f32 %v1330_v34, %v2853_v38  ;;  %v2865_v0 = vand.u32 4294901760, %v1328_v46 }
 0x166   :  { %v655_v10 = vsel %vm242_vm2, %v450_v57, 0  ;;  %1013 = vmatpush.msrb.mxu3 %v2744_v62  ;;  %1048 = vmatpush.msrb.mxu0 %v936_v4  ;;  %v519_v57 = vpop.f32.mrf.mxu1 }
 0x167   :  { %v2799_v16 = vand.u32 4294901760, %v655_v10  ;;  %v681_v18 = vand.u32 4294901760, %v680_v1  ;;  %1079 = vmatpush.msrb.mxu1 %v2734_v49  ;;  %v1161_v49 = vsub.f32 %v2781_v47, %v1160_v59  ;;  %v1388_v15 = vand.u32 4294901760, %v2858_v40 }
 0x168   :  { %1015 = vmatpush.msrb.mxu3 %v2752_v5  ;;  %1052 = vmatpush.msrb.mxu0 %v942_v12  ;;  %v1172_v12 = vand.u32 4294901760, %v2805_v20 }
 0x169   :  { %682 = vmatmul.f32.vlgmr.msrb.gmra.mxu2 %v681_v18  ;;  %735 = vmatmul.f32.gmra.mxu3 %v2799_v16  ;;  %v686_v4 = vsub.f32 %v655_v10, %v2799_v16  ;;  %v1327_v10 = vld [vmem:[#allocation6 + $0x68] sm:$0xff] }
 0x16a   :  { %1081 = vmatpush.msrb.mxu1 %v2740_v55  ;;  %975 = vmatpush.msrb.mxu2 %v2738_v54  ;;  %v1167_v54 = vsub.f32 %v2790_v3, %v1166_v19  ;;  %v1178_v55 = vand.u32 4294901760, %v2821_v23  ;;  %v2873_v18 = vand.u32 4294901760, %v1327_v10 }
 0x16b   :  { %770 = vmatmul.f32.gmra.mxu0 %v686_v4  ;;  %v687_v24 = vand.u32 4294901760, %v686_v4  ;;  %v575_v14 = vpop.f32.mrf.mxu3 }
 0x16c   :  { %1056 = vmatpush.msrb.mxu0 %v948_v17  ;;  %1083 = vmatpush.msrb.mxu1 %v2744_v62  ;;  %v1162_v62 = vand.u32 4294901760, %v1161_v49  ;;  %v1173_v17 = vsub.f32 %v2805_v20, %v1172_v12  ;;  %v1168_v31 = vand.u32 4294901760, %v1167_v54  ;;  %v1179_v32 = vsub.f32 %v2821_v23, %v1178_v55 }
 0x16d   :  { %803 = vmatmul.f32.gmra.mxu1 %v687_v24  ;;  %v688_v26 = vsub.f32 %v686_v4, %v687_v24  ;;  %978 = vmatpush.msrb.mxu2 %v2747_v63  ;;  %v903_v63 = vand.u32 4294901760, %v902_v27  ;;  %v2878_v4 = vsub.f32 %v1328_v46, %v2865_v0  ;;  %v2885_v24 = vsub.f32 %v1327_v10, %v2873_v18 }
 0x16e   :  { %1085 = vmatpush.msrb.mxu1 %v2752_v5  ;;  %v909_v5 = vand.u32 4294901760, %v2834_v28  ;;  %v1174_v33 = vand.u32 4294901760, %v1173_v17  ;;  %v1389_v54 = vsub.f32 %v2858_v40, %v1388_v15  ;;  %v550_v17 = vpop.f32.mrf.mxu2 }
 0x16f   :  { %v689_v29 = vand.u32 4294901760, %v688_v26  ;;  %981 = vmatpush.msrb.mxu2 %v2755_v6  ;;  %v1180_v6 = vand.u32 4294901760, %v1179_v32  ;;  %v520_v26 = vadd.f32 %v519_v57, %v484_v37  ;;  %v612_v37 = vpop.f32.mrf.mxu0 }
 0x170   :  { %v910_v35 = vsub.f32 %v2834_v28, %v909_v5  ;;  %v1390_v32 = vand.u32 4294901760, %v1389_v54 }
 0x171   :  { %690 = vmatmul.f32.gmra.mxu2 %v689_v29  ;;  %865 = vmatmul.f32.vlgmr.msra.gmra.mxu3 %v2771_v36  ;;  %v1104_v29 = vsel %vm242_vm2, %v2710_v11, 0 }
 0x172   :  { %984 = vmatpush.msrb.mxu2 %v2761_v13  ;;  %1163 = vmatpush.msra.mxu3 %v1162_v62  ;;  %v1329_v13 = vld [vmem:[#allocation6 + $0x78] sm:$0xff]  ;;  %v911_v51 = vand.u32 4294901760, %v910_v35  ;;  %v1400_v62 = vand.u32 4294901760, %v2878_v4 }
 0x173   :  { %904 = vmatmul.f32.vlgmr.msra.gmra.mxu0 %v903_v63  ;;  %v2860_v44 = vand.u32 4294901760, %v1329_v13 }
 0x174   :  { %1169 = vmatpush.msra.mxu3 %v1168_v31  ;;  %1205 = vmatpush.msra.mxu0 %v2781_v47  ;;  %v1406_v31 = vand.u32 4294901760, %v2885_v24  ;;  %v1401_v11 = vsub.f32 %v2878_v4, %v1400_v62 }
 0x175   :  { %953 = vmatmul.f32.vlgmr.msra.gmra.mxu1 %v2775_v41  ;;  %v2870_v1 = vsub.f32 %v1329_v13, %v2860_v44  ;;  %v1107_v13 = vsel %vm242_vm2, %v2707_v9, 0 }
 0x176   :  { %1175 = vmatpush.msra.mxu3 %v1174_v33  ;;  %1208 = vmatpush.msra.mxu0 %v2790_v3  ;;  %v581_v33 = vpop.f32.mrf.mxu3 }
 0x177   :  { %1239 = vmatpush.msra.mxu1 %v2777_v42  ;;  %v1394_v49 = vand.u32 4294901760, %v2870_v1 }
 0x178   :  { %1181 = vmatpush.msra.mxu3 %v1180_v6  ;;  %1211 = vmatpush.msra.mxu0 %v2805_v20 }
 0x179   :  { %836 = vmatmul.f32.vlgmr.msra.gmra.mxu2 %v2771_v36  ;;  %869 = vmatmul.f32.gmra.mxu3 %v2799_v16  ;;  %v546_v36 = vadd.f32 %v545_v39, %v516_v45  ;;  %v1395_v30 = vsub.f32 %v2870_v1, %v1394_v49 }
 0x17a   :  { %1241 = vmatpush.msra.mxu1 %v2783_v50  ;;  %1122 = vmatpush.msra.mxu2 %v2777_v42 }
 0x17b   :  { %912 = vmatmul.f32.gmra.mxu0 %v911_v51  ;;  %v576_v27 = vadd.f32 %v575_v14, %v546_v36  ;;  %v1396_v6 = vand.u32 4294901760, %v1395_v30 }
 0x17c   :  { %1214 = vmatpush.msra.mxu0 %v2821_v23  ;;  %1243 = vmatpush.msra.mxu1 %v2792_v8 }
 0x17d   :  { %957 = vmatmul.f32.gmra.mxu1 %v2812_v22  ;;  %1124 = vmatpush.msra.mxu2 %v2783_v50  ;;  %v609_v63 = vadd.f32 %v608_v25, %v576_v27 }
 0x17e   :  { %1245 = vmatpush.msra.mxu1 %v2807_v58 }
 0x17f   :  { %1126 = vmatpush.msra.mxu2 %v2792_v8 }
 0x181   :  { %840 = vmatmul.f32.gmra.mxu2 %v2799_v16  ;;  %1019 = vmatmul.f32.vlgmr.msrb.gmra.mxu3 %v901_v21  ;;  %v635_v16 = vpop.f32.mrf.mxu1  ;;  %v551_v21 = vadd.f32 %v550_v17, %v520_v26 }
 0x182   :  { %1128 = vmatpush.msra.mxu2 %v2807_v58  ;;  %1309 = vmatpush.msrb.mxu3 %v2777_v42  ;;  %v2910_v42 = vand.u32 4294901760, %v1104_v29  ;;  %v636_v34 = vadd.f32 %v635_v16, %v609_v63 }
 0x183   :  { %1058 = vmatmul.f32.vlgmr.msrb.gmra.mxu0 %v2775_v41  ;;  %v582_v35 = vadd.f32 %v581_v33, %v551_v21 }
 0x184   :  { %1311 = vmatpush.msrb.mxu3 %v2783_v50  ;;  %1350 = vmatpush.msrb.mxu0 %v2853_v38  ;;  %v1407_v50 = vsub.f32 %v2885_v24, %v1406_v31 }
 0x185   :  { %1087 = vmatmul.f32.vlgmr.msrb.gmra.mxu1 %v2775_v41  ;;  %v1402_v41 = vand.u32 4294901760, %v1401_v11  ;;  %v613_v45 = vadd.f32 %v612_v37, %v582_v35 }
 0x186   :  { %1313 = vmatpush.msrb.mxu3 %v2792_v8  ;;  %1352 = vmatpush.msrb.mxu0 %v2860_v44  ;;  %v1130_v8 = vsub.f32 %v1104_v29, %v2910_v42  ;;  %v1408_v39 = vand.u32 4294901760, %v1407_v50 }
 0x187   :  { %1391 = vmatpush.msrb.mxu1 %v1390_v32 }
 0x188   :  { %1315 = vmatpush.msrb.mxu3 %v2807_v58  ;;  %1354 = vmatpush.msrb.mxu0 %v2865_v0  ;;  %v1332_v58 = vsel %vm242_vm2, %v636_v34, 0 }
 0x189   :  { %987 = vmatmul.f32.vlgmr.msrb.gmra.mxu2 %v2787_v2  ;;  %1025 = vmatmul.f32.gmra.mxu3 %v909_v5  ;;  %v1131_v2 = vand.u32 4294901760, %v1130_v8  ;;  %v1137_v5 = vand.u32 4294901760, %v1107_v13  ;;  %v639_v46 = vpop.f32.mrf.mxu1  ;;  %v1357_v9 = vand.u32 4294901760, %v1332_v58 }
 0x18a   :  { %1397 = vmatpush.msrb.mxu1 %v1396_v6  ;;  %1274 = vmatpush.msrb.mxu2 %v1160_v59  ;;  %v640_v47 = vadd.f32 %v639_v46, %v613_v45 }
 0x18b   :  { %1062 = vmatmul.f32.gmra.mxu0 %v2812_v22  ;;  %v1132_v59 = vsub.f32 %v1130_v8, %v1131_v2  ;;  %v1138_v51 = vsub.f32 %v1107_v13, %v1137_v5  ;;  %v1358_v3 = vsub.f32 %v1332_v58, %v1357_v9 }
 0x18c   :  { %1356 = vmatpush.msrb.mxu0 %v2873_v18  ;;  %1403 = vmatpush.msrb.mxu1 %v1402_v41 }
 0x18d   :  { %1091 = vmatmul.f32.gmra.mxu1 %v2812_v22  ;;  %1278 = vmatpush.msrb.mxu2 %v1166_v19  ;;  %v1335_v19 = vsel %vm242_vm2, %v640_v47, 0  ;;  %v1133_v20 = vand.u32 4294901760, %v1132_v59  ;;  %v1139_v22 = vand.u32 4294901760, %v1138_v51 }
 0x18e   :  { %1409 = vmatpush.msrb.mxu1 %v1408_v39  ;;  %v1365_v23 = vand.u32 4294901760, %v1335_v19 }
 0x18f   :  { %1282 = vmatpush.msrb.mxu2 %v1172_v12  ;;  %v1359_v12 = vand.u32 4294901760, %v1358_v3 }
 0x191   :  { %992 = vmatmul.f32.gmra.mxu2 %v2834_v28  ;;  %1183 = vmatmul.f32.vlgmr.msra.gmra.mxu3 %v2910_v42  ;;  %v1366_v28 = vsub.f32 %v1335_v19, %v1365_v23  ;;  %v1360_v57 = vsub.f32 %v1358_v3, %v1359_v12 }
 0x192   :  { %1286 = vmatpush.msrb.mxu2 %v1178_v55  ;;  %1467 = vmatpush.msra.mxu3 %v2853_v38  ;;  %v1140_v55 = vsub.f32 %v1138_v51, %v1139_v22 }
 0x193   :  { %1217 = vmatmul.f32.vlgmr.msra.gmra.mxu0 %v1130_v8  ;;  %v1361_v10 = vand.u32 4294901760, %v1360_v57  ;;  %v1367_v14 = vand.u32 4294901760, %v1366_v28 }
 0x194   :  { %1469 = vmatpush.msra.mxu3 %v2860_v44  ;;  %1502 = vmatpush.msra.mxu0 %v1388_v15 }
 0x195   :  { %1249 = vmatmul.f32.vlgmr.msra.gmra.mxu1 %v1131_v2 }
 0x196   :  { %1471 = vmatpush.msra.mxu3 %v2865_v0  ;;  %1506 = vmatpush.msra.mxu0 %v1394_v49 }
 0x197   :  { %1537 = vmatpush.msra.mxu1 %v2853_v38  ;;  %v1141_v38 = vand.u32 4294901760, %v1140_v55 }
 0x198   :  { %1473 = vmatpush.msra.mxu3 %v2873_v18  ;;  %1510 = vmatpush.msra.mxu0 %v1400_v62 }
 0x199   :  { %1134 = vmatmul.f32.vlgmr.msra.gmra.mxu2 %v1133_v20  ;;  %1187 = vmatmul.f32.gmra.mxu3 %v1137_v5 }
 0x19a   :  { %1539 = vmatpush.msra.mxu1 %v2860_v44  ;;  %1433 = vmatpush.msra.mxu2 %v2858_v40  ;;  %v1368_v40 = vsub.f32 %v1366_v28, %v1367_v14 }
 0x19b   :  { %1222 = vmatmul.f32.gmra.mxu0 %v1138_v51 }
 0x19c   :  { %1514 = vmatpush.msra.mxu0 %v1406_v31  ;;  %1541 = vmatpush.msra.mxu1 %v2865_v0  ;;  %v1369_v44 = vand.u32 4294901760, %v1368_v40 }
 0x19d   :  { %1255 = vmatmul.f32.gmra.mxu1 %v1139_v22  ;;  %1436 = vmatpush.msra.mxu2 %v2870_v1 }
 0x19e   :  { %1543 = vmatpush.msra.mxu1 %v2873_v18 }
 0x19f   :  { %1439 = vmatpush.msra.mxu2 %v2878_v4 }
 0x1a1   :  { %1142 = vmatmul.f32.gmra.mxu2 %v1141_v38  ;;  %1317 = vmatmul.f32.vlgmr.msrb.gmra.mxu3 %v2910_v42 }
 0x1a2   :  { %1442 = vmatpush.msra.mxu2 %v2885_v24 }
 0x1a3   :  { %1362 = vmatmul.f32.vlgmr.msrb.gmra.mxu0 %v1361_v10 }
 0x1a5   :  { %1411 = vmatmul.f32.vlgmr.msrb.gmra.mxu1 %v1357_v9 }
 0x1a9   :  { %1288 = vmatmul.f32.vlgmr.msrb.gmra.mxu2 %v2910_v42  ;;  %1321 = vmatmul.f32.gmra.mxu3 %v1137_v5 }
 0x1ab   :  { %1370 = vmatmul.f32.gmra.mxu0 %v1369_v44 }
 0x1ad   :  { %1415 = vmatmul.f32.gmra.mxu1 %v1365_v23 }
 0x1b1   :  { %1292 = vmatmul.f32.gmra.mxu2 %v1137_v5  ;;  %1477 = vmatmul.f32.vlgmr.msra.gmra.mxu3 %v1359_v12 }
 0x1b3   :  { %1516 = vmatmul.f32.vlgmr.msra.gmra.mxu0 %v1357_v9 }
 0x1b5   :  { %1545 = vmatmul.f32.vlgmr.msra.gmra.mxu1 %v1357_v9 }
 0x1b9   :  { %1445 = vmatmul.f32.vlgmr.msra.gmra.mxu2 %v1358_v3  ;;  %1483 = vmatmul.f32.gmra.mxu3 %v1367_v14 }
 0x1bb   :  { %1520 = vmatmul.f32.gmra.mxu0 %v1365_v23 }
 0x1bd   :  { %1549 = vmatmul.f32.gmra.mxu1 %v1365_v23 }
 0x1c1   :  { %1450 = vmatmul.f32.gmra.mxu2 %v1366_v28 }
 0x1e0   :  { %v766_v0 = vpop.f32.mrf.mxu0 }
 0x1e2   :  { %v798_v1 = vpop.f32.mrf.mxu1 }
 0x1e4   :  { %v732_v15 = vpop.f32.mrf.mxu3 }
 0x1e8   :  { %v771_v18 = vpop.f32.mrf.mxu0 }
 0x1ea   :  { %v804_v36 = vpop.f32.mrf.mxu1 }
 0x1ec   :  { %v683_v4 = vpop.f32.mrf.mxu2  ;;  %v736_v49 = vpop.f32.mrf.mxu3 }
 0x1ed   :  { %v733_v24 = vadd.f32 %v732_v15, %v683_v4 }
 0x1ef   :  { %v767_v25 = vadd.f32 %v766_v0, %v733_v24 }
 0x1f0   :  { %v905_v54 = vpop.f32.mrf.mxu0 }
 0x1f1   :  { %v799_v26 = vadd.f32 %v798_v1, %v767_v25 }
 0x1f2   :  { %v954_v27 = vpop.f32.mrf.mxu1 }
 0x1f4   :  { %v691_v62 = vpop.f32.mrf.mxu2  ;;  %v866_v17 = vpop.f32.mrf.mxu3 }
 0x1f5   :  { %v737_v46 = vadd.f32 %v736_v49, %v691_v62 }
 0x1f7   :  { %v772_v59 = vadd.f32 %v771_v18, %v737_v46 }
 0x1f8   :  { %v913_v29 = vpop.f32.mrf.mxu0 }
 0x1f9   :  { %v805_v3 = vadd.f32 %v804_v36, %v772_v59 }
 0x1fa   :  { %v958_v30 = vpop.f32.mrf.mxu1 }
 0x1fc   :  { %v837_v31 = vpop.f32.mrf.mxu2  ;;  %v870_v16 = vpop.f32.mrf.mxu3 }
 0x1fd   :  { %v838_v32 = vadd.f32 %v837_v31, %v799_v26 }
 0x1ff   :  { %v867_v63 = vadd.f32 %v866_v17, %v838_v32  ;;  %v2543_v17 = vld [vmem:[#allocation6 + $0xe9] ss:$0 sm:$0xff] }
 0x200   :  { %v1059_v21 = vpop.f32.mrf.mxu0 }
 0x201   :  { %v906_v11 = vadd.f32 %v905_v54, %v867_v63 }
 0x202   :  { %v1088_v42 = vpop.f32.mrf.mxu1 }
 0x203   :  { %v955_v33 = vadd.f32 %v954_v27, %v906_v11 }
 0x204   :  { %v841_v6 = vpop.f32.mrf.mxu2  ;;  %v1020_v50 = vpop.f32.mrf.mxu3 }
 0x205   :  { %v842_v20 = vadd.f32 %v841_v6, %v805_v3 }
 0x207   :  { %v871_v23 = vadd.f32 %v870_v16, %v842_v20 }
 0x208   :  { %v1063_v34 = vpop.f32.mrf.mxu0 }
 0x209   :  { %v914_v38 = vadd.f32 %v913_v29, %v871_v23 }
 0x20a   :  { %v1092_v8 = vpop.f32.mrf.mxu1 }
 0x20b   :  { %v959_v1 = vadd.f32 %v958_v30, %v914_v38 }
 0x20c   :  { %v988_v35 = vpop.f32.mrf.mxu2  ;;  %v1026_v41 = vpop.f32.mrf.mxu3 }
 0x20d   :  { %v989_v55 = vadd.f32 %v988_v35, %v955_v33 }
 0x20f   :  { %v1021_v40 = vadd.f32 %v1020_v50, %v989_v55 }
 0x210   :  { %v1218_v39 = vpop.f32.mrf.mxu0 }
 0x211   :  { %v1060_v15 = vadd.f32 %v1059_v21, %v1021_v40 }
 0x212   :  { %v1250_v58 = vpop.f32.mrf.mxu1 }
 0x213   :  { %v1089_v26 = vadd.f32 %v1088_v42, %v1060_v15 }
 0x214   :  { %v993_v37 = vpop.f32.mrf.mxu2  ;;  %v1184_v13 = vpop.f32.mrf.mxu3 }
 0x215   :  { %v994_v4 = vadd.f32 %v993_v37, %v959_v1  ;;  %v2962_v33 = vadd.f32 %v2543_v17, %v1089_v26 }
 0x217   :  { %v1027_v27 = vadd.f32 %v1026_v41, %v994_v4 }
 0x218   :  { %v1223_v5 = vpop.f32.mrf.mxu0 }
 0x219   :  { %v1064_v11 = vadd.f32 %v1063_v34, %v1027_v27  ;;  %v1796_v27 = vld [vmem:[#allocation6 + $0xa0] sm:$0xff] }
 0x21a   :  { %v1256_v9 = vpop.f32.mrf.mxu1 }
 0x21b   :  { %v1093_v42 = vadd.f32 %v1092_v8, %v1064_v11  ;;  %v2983_v11 = vld [vmem:[#allocation3 + $0x8] sm:$0xff] }
 0x21c   :  { %v1135_v45 = vpop.f32.mrf.mxu2  ;;  %v1188_v2 = vpop.f32.mrf.mxu3 }
 0x21d   :  { %v1185_v28 = vadd.f32 %v1184_v13, %v1135_v45 }
 0x21f   :  { %v1219_v44 = vadd.f32 %v1218_v39, %v1185_v28 }
 0x220   :  { %v1363_v19 = vpop.f32.mrf.mxu0 }
 0x221   :  { %v1251_v49 = vadd.f32 %v1250_v58, %v1219_v44 }
 0x222   :  { %v1412_v22 = vpop.f32.mrf.mxu1 }
 0x223   :  { %v1413_v36 = vadd.f32 %v1412_v22, %v1363_v19 }
 0x224   :  { %v1143_v47 = vpop.f32.mrf.mxu2  ;;  %v1318_v51 = vpop.f32.mrf.mxu3 }
 0x225   :  { %v1189_v18 = vadd.f32 %v1188_v2, %v1143_v47  ;;  %v2965_v47 = vadd.f32 %v2543_v17, %v1093_v42  ;;  %v2974_v17 = vand.u32 4294901760, %v1796_v27 }
 0x227   :  { %v1224_v62 = vadd.f32 %v1223_v5, %v1189_v18 }
 0x228   :  { %v1371_v10 = vpop.f32.mrf.mxu0 }
 0x229   :  { %v1257_v30 = vadd.f32 %v1256_v9, %v1224_v62  ;;  %v1795_v62 = vld [vmem:[#allocation6 + $0x98] sm:$0xff] }
 0x22a   :  { %v1416_v0 = vpop.f32.mrf.mxu1 }
 0x22b   :  { %v1417_v6 = vadd.f32 %v1416_v0, %v1371_v10 }
 0x22c   :  { %v1289_v12 = vpop.f32.mrf.mxu2  ;;  %v1322_v57 = vpop.f32.mrf.mxu3 }
 0x22d   :  { %v1290_v24 = vadd.f32 %v1289_v12, %v1251_v49 }
 0x22f   :  { %v1319_v16 = vadd.f32 %v1318_v51, %v1290_v24 }
 0x230   :  { %v1517_v29 = vpop.f32.mrf.mxu0 }
 0x231   :  { %v1325_v50 = vadd.f32 %v1319_v16, %v2962_v33 }
 0x232   :  { %v1546_v63 = vpop.f32.mrf.mxu1 }
 0x234   :  { %v1293_v14 = vpop.f32.mrf.mxu2  ;;  %v1478_v25 = vpop.f32.mrf.mxu3 }
 0x235   :  { %v1294_v35 = vadd.f32 %v1293_v14, %v1257_v30 }
 0x237   :  { %v1323_v45 = vadd.f32 %v1322_v57, %v1294_v35 }
 0x238   :  { %v1521_v46 = vpop.f32.mrf.mxu0 }
 0x239   :  { %v1326_v59 = vadd.f32 %v1323_v45, %v2965_v47 }
 0x23a   :  { %v1550_v9 = vpop.f32.mrf.mxu1 }
 0x23c   :  { %v1446_v54 = vpop.f32.mrf.mxu2  ;;  %v1484_v58 = vpop.f32.mrf.mxu3 }
 0x23d   :  { %v1447_v31 = vadd.f32 %v1446_v54, %v1413_v36 }
 0x23f   :  { %v1479_v32 = vadd.f32 %v1478_v25, %v1447_v31  ;;  %v1794_v31 = vld [vmem:[#allocation6 + $0x90] sm:$0xff] }
 0x241   :  { %v1518_v21 = vadd.f32 %v1517_v29, %v1479_v32  ;;  %v2976_v29 = vand.u32 4294901760, %v1795_v62  ;;  %v2979_v32 = vsub.f32 %v1796_v27, %v2974_v17 }
 0x243   :  { %v1547_v37 = vadd.f32 %v1546_v63, %v1518_v21  ;;  %v2981_v63 = vand.u32 4294901760, %v1794_v31  ;;  %v1793_v21 = vld [vmem:[#allocation6 + $0x88] sm:$0xff]  ;;  %v1854_v35 = vand.u32 4294901760, %v2979_v32 }
 0x244   :  { %v1451_v13 = vpop.f32.mrf.mxu2 }
 0x245   :  { %v1553_v41 = vadd.f32 %v1547_v37, %v1325_v50  ;;  %v1452_v39 = vadd.f32 %v1451_v13, %v1417_v6  ;;  %v2987_v6 = vsub.f32 %v1795_v62, %v2976_v29  ;;  %v2991_v37 = vsub.f32 %v1794_v31, %v2981_v63  ;;  %v2029_v62 = vld [vmem:[#allocation6 + $0xa8] sm:$0xff] }
 0x246   :  { %v2993_v13 = vand.u32 4294901760, %v1793_v21  ;;  %v1855_v45 = vsub.f32 %v2979_v32, %v1854_v35 }
 0x247   :  { %v2532_v2 = vmul.f32 -1.442695, %v1553_v41  ;;  %v1485_v5 = vadd.f32 %v1484_v58, %v1452_v39  ;;  %v1860_v41 = vand.u32 4294901760, %v2987_v6 }
 0x249   :  { %2545 = vpow2.f32 %v2532_v2  ;;  %v1522_v34 = vadd.f32 %v1521_v46, %v1485_v5  ;;  %v1866_v2 = vand.u32 4294901760, %v2991_v37  ;;  %v3001_v5 = vsub.f32 %v1793_v21, %v2993_v13  ;;  %v3003_v46 = vld [vmem:[#allocation3] sm:$0xff] }
 0x24b   :  { %v1551_v51 = vadd.f32 %v1550_v9, %v1522_v34 }
 0x24d   :  { %v1554_v3 = vadd.f32 %v1551_v51, %v1326_v59  ;;  %v1861_v59 = vsub.f32 %v2987_v6, %v1860_v41 }
 0x24f   :  { %v2546_v19 = vpop.eup %2545  ;;  %v2533_v20 = vmul.f32 -1.442695, %v1554_v3 }
 0x250   :  { %v1561_v8 = vadd.f32 1.0, %v2546_v19 }
 0x251   :  { %2547 = vpow2.f32 %v2533_v20  ;;  %v1856_v20 = vand.u32 4294901760, %v1855_v45 }
 0x252   :  { %2549 = vrcp.f32 %v1561_v8  ;;  %v1574_v36 = vand.u32 2147483648, %v1561_v8  ;;  %vm1568_vm8 = vweird.f32 %v1561_v8  ;;  %v1572_v24 = vand.u32 2147483647, %v1561_v8 }
 0x254   :  { %v1575_v54 = vor.u32 1.1754944e-38, %v1574_v36  ;;  %vm1573_vm10 = vcmp.eq.f32.partialorder %v1572_v24, 8.507059e+37  ;;  %v2031_v36 = vld [vmem:[#allocation6 + $0xb8] sm:$0xff] }
 0x257   :  { %v2548_v22 = vpop.eup %2547 }
 0x258   :  { %v1562_v12 = vadd.f32 1.0, %v2548_v22  ;;  %v2550_v23 = vpop.eup %2549  ;;  %v1872_v22 = vand.u32 4294901760, %v3001_v5 }
 0x259   :  { %v1564_v55 = vmul.f32 %v2550_v23, %v1561_v8  ;;  %vm1569_vm7 = vweird.f32 %v2550_v23  ;;  %v1867_v8 = vsub.f32 %v2991_v37, %v1866_v2 }
 0x25a   :  { %2551 = vrcp.f32 %v1562_v12  ;;  %v1589_v14 = vand.u32 2147483648, %v1562_v12  ;;  %v1587_v44 = vand.u32 2147483647, %v1562_v12  ;;  %vm1583_vm4 = vweird.f32 %v1562_v12  ;;  %vm1570_vm9 = vmor %vm1568_vm8, %vm1569_vm7 }
 0x25b   :  { %v1565_v10 = vsub.f32 1.0, %v1564_v55 }
 0x25c   :  { %v1590_v15 = vor.u32 1.1754944e-38, %v1589_v14  ;;  %vm1588_vm6 = vcmp.eq.f32.partialorder %v1587_v44, 8.507059e+37 }
 0x25d   :  { %v1566_v1 = vmul.f32 %v2550_v23, %v1565_v10 }
 0x25f   :  { %v1567_v49 = vadd.f32 %v2550_v23, %v1566_v1 }
 0x260   :  { %v2552_v28 = vpop.eup %2551 }
 0x261   :  { %v1579_v57 = vmul.f32 %v2552_v28, %v1562_v12  ;;  %vm1584_vm3 = vweird.f32 %v2552_v28  ;;  %v1571_v25 = vsel %vm1570_vm9, %v2550_v23, %v1567_v49  ;;  %v1862_v23 = vand.u32 4294901760, %v1861_v59 }
 0x262   :  { %vm1585_vm5 = vmor %vm1583_vm4, %vm1584_vm3  ;;  %v2971_v26 = vsel %vm1573_vm10, %v1575_v54, %v1571_v25  ;;  %v2030_v25 = vld [vmem:[#allocation6 + $0xb0] sm:$0xff] }
 0x263   :  { %v1580_v38 = vsub.f32 1.0, %v1579_v57  ;;  %v1868_v57 = vand.u32 4294901760, %v1867_v8  ;;  %v2055_v27 = vand.u32 4294901760, %v2030_v25 }
 0x265   :  { %v1581_v40 = vmul.f32 %v2552_v28, %v1580_v38  ;;  %v1873_v38 = vsub.f32 %v3001_v5, %v1872_v22 }
 0x267   :  { %v1582_v0 = vadd.f32 %v2552_v28, %v1581_v40  ;;  %v1874_v40 = vand.u32 4294901760, %v1873_v38 }
 0x269   :  { %v1586_v4 = vsel %vm1585_vm5, %v2552_v28, %v1582_v0 }
 0x26a   :  { %v2968_v18 = vsel %vm1588_vm6, %v1590_v15, %v1586_v4  ;;  %v2032_v4 = vld [vmem:[#allocation6 + $0xc0] sm:$0xff] }
 0x26b   :  { %1597 = vrot.lane.b32.xlu0 %v2968_v18, %s2619_s0  ;;  %v2051_v49 = vand.u32 4294901760, %v2032_v4 }
 0x26d   :  { %v2089_v24 = vsub.f32 %v2032_v4, %v2051_v49 }
 0x26f   :  { %v2090_v54 = vand.u32 4294901760, %v2089_v24 }
 0x273   :  { %1595 = vrot.lane.b32.xlu0 %v2971_v26, %s2619_s0 }
 0x2dd   :  { %v1598_v16 = vpop.permute.xlu0 %1597 }
 0x2de   :  { %v1602_v30 = vmul.f32 %v2983_v11, %v1598_v16  ;;  %v2057_v16 = vand.u32 4294901760, %v2029_v62 }
 0x2e0   :  { %v1617_v50 = vand.u32 4294901760, %v1602_v30  ;;  %v2107_v21 = vsub.f32 %v2029_v62, %v2057_v16 }
 0x2e2   :  { %v1653_v42 = vsub.f32 %v1602_v30, %v1617_v50  ;;  %1618 = vmatpush.msrb.mxu2 %v1617_v50  ;;  %1719 = vmatpush.msrb.mxu1 %v1617_v50 }
 0x2e4   :  { %v1654_v39 = vand.u32 4294901760, %v1653_v42  ;;  %1689 = vmatpush.msrb.mxu0 %v1653_v42 }
 0x2e5   :  { %v1596_v58 = vpop.permute.xlu0 %1595 }
 0x2e6   :  { %v1601_v34 = vmul.f32 %v3003_v46, %v1596_v58  ;;  %v1655_v9 = vsub.f32 %v1653_v42, %v1654_v39 }
 0x2e8   :  { %v1619_v51 = vand.u32 4294901760, %v1601_v34  ;;  %v1656_v3 = vand.u32 4294901760, %v1655_v9  ;;  %v1798_v19 = vsel %vm242_vm2, %v1601_v34, 0 }
 0x2e9   :  { %v3013_v55 = vand.u32 4294901760, %v1798_v19 }
 0x2ea   :  { %1620 = vmatpush.msrb.mxu2 %v1619_v51  ;;  %1657 = vmatpush.msrb.mxu3 %v1656_v3  ;;  %v1659_v12 = vsub.f32 %v1601_v34, %v1619_v51 }
 0x2eb   :  { %1721 = vmatpush.msrb.mxu1 %v1619_v51  ;;  %1626 = vmatmul.f32.vlgmr.msrb.gmra.mxu2 %v2690_v60  ;;  %v1824_v60 = vsub.f32 %v1798_v19, %v3013_v55 }
 0x2ec   :  { %1725 = vmatmul.f32.vlgmr.msrb.gmra.mxu1 %v2676_v52  ;;  %1752 = vmatpush.msra.mxu2 %v1654_v39  ;;  %v1660_v28 = vand.u32 4294901760, %v1659_v12  ;;  %v1801_v52 = vsel %vm242_vm2, %v1602_v30, 0 }
 0x2ed   :  { %1692 = vmatpush.msrb.mxu0 %v1659_v12  ;;  %1857 = vmatpush.msra.mxu1 %v1856_v20  ;;  %v1825_v44 = vand.u32 4294901760, %v1824_v60 }
 0x2ee   :  { %1695 = vmatmul.f32.vlgmr.msrb.gmra.mxu0 %v2669_v48  ;;  %1756 = vmatpush.msra.mxu2 %v1660_v28  ;;  %v1661_v10 = vsub.f32 %v1659_v12, %v1660_v28  ;;  %v1831_v48 = vand.u32 4294901760, %v1801_v52 }
 0x2ef   :  { %1816 = vmatpush.msra.mxu0 %v2974_v17  ;;  %1863 = vmatpush.msra.mxu1 %v1862_v23  ;;  %v1826_v1 = vsub.f32 %v1824_v60, %v1825_v44 }
 0x2f0   :  { %v1662_v14 = vand.u32 4294901760, %v1661_v10  ;;  %1899 = vmatpush.msrb.mxu2 %v2979_v32  ;;  %v1832_v0 = vsub.f32 %v1801_v52, %v1831_v48 }
 0x2f1   :  { %1818 = vmatpush.msra.mxu0 %v2976_v29  ;;  %1869 = vmatpush.msra.mxu1 %v1868_v57 }
 0x2f2   :  { %1663 = vmatpush.msrb.mxu3 %v1662_v14  ;;  %1902 = vmatpush.msrb.mxu2 %v2987_v6 }
 0x2f3   :  { %1634 = vmatmul.f32.gmra.mxu2 %v2703_v7  ;;  %1665 = vmatmul.f32.vlgmr.msrb.gmra.mxu3 %v2663_v43 }
 0x2f4   :  { %1731 = vmatmul.f32.gmra.mxu1 %v2693_v61  ;;  %1781 = vmatpush.msra.mxu3 %v1617_v50  ;;  %v1833_v61 = vand.u32 4294901760, %v1832_v0 }
 0x2f5   :  { %1820 = vmatpush.msra.mxu0 %v2981_v63  ;;  %1875 = vmatpush.msra.mxu1 %v1874_v40 }
 0x2f6   :  { %1700 = vmatmul.f32.gmra.mxu0 %v2684_v56  ;;  %1783 = vmatpush.msra.mxu3 %v1619_v51  ;;  %v1827_v56 = vand.u32 4294901760, %v1826_v1  ;;  %v1834_v7 = vsub.f32 %v1832_v0, %v1833_v61 }
 0x2f7   :  { %1822 = vmatpush.msra.mxu0 %v2993_v13  ;;  %2003 = vmatpush.msrb.mxu1 %v2974_v17 }
 0x2f8   :  { %1905 = vmatpush.msrb.mxu2 %v2991_v37  ;;  %1933 = vmatpush.msrb.mxu3 %v2974_v17  ;;  %v1835_v15 = vand.u32 4294901760, %v1834_v7  ;;  %v2091_v17 = vsub.f32 %v2089_v24, %v2090_v54 }
 0x2f9   :  { %1968 = vmatpush.msrb.mxu0 %v1854_v35  ;;  %2005 = vmatpush.msrb.mxu1 %v2976_v29  ;;  %v2108_v35 = vand.u32 4294901760, %v2107_v21 }
 0x2fa   :  { %1908 = vmatpush.msrb.mxu2 %v3001_v5  ;;  %1935 = vmatpush.msrb.mxu3 %v2976_v29  ;;  %v2101_v29 = vsub.f32 %v2030_v25, %v2055_v27  ;;  %v2092_v32 = vand.u32 4294901760, %v2091_v17 }
 0x2fb   :  { %1972 = vmatpush.msrb.mxu0 %v1860_v41  ;;  %1669 = vmatmul.f32.gmra.mxu3 %v2678_v53 }
 0x2fc   :  { %1758 = vmatmul.f32.vlgmr.msra.gmra.mxu2 %v2663_v43  ;;  %1877 = vmatmul.f32.vlgmr.msra.gmra.mxu1 %v3013_v55  ;;  %v2102_v30 = vand.u32 4294901760, %v2101_v29 }
 0x2fd   :  { %1976 = vmatpush.msrb.mxu0 %v1866_v2  ;;  %2007 = vmatpush.msrb.mxu1 %v2981_v63 }
 0x2fe   :  { %1828 = vmatmul.f32.vlgmr.msra.gmra.mxu0 %v1827_v56  ;;  %1937 = vmatpush.msrb.mxu3 %v2981_v63  ;;  %v2103_v50 = vsub.f32 %v2101_v29, %v2102_v30 }
 0x2ff   :  { %2009 = vmatpush.msrb.mxu1 %v2993_v13  ;;  %1980 = vmatpush.msrb.mxu0 %v1872_v22 }
 0x300   :  { %1939 = vmatpush.msrb.mxu3 %v2993_v13  ;;  %2052 = vmatpush.msra.mxu2 %v2051_v49  ;;  %v2104_v37 = vand.u32 4294901760, %v2103_v50  ;;  %v2109_v13 = vsub.f32 %v2107_v21, %v2108_v35 }
 0x301   :  { %2169 = vmatpush.msra.mxu1 %v2051_v49  ;;  %2135 = vmatpush.msra.mxu0 %v2089_v24 }
 0x302   :  { %v2110_v42 = vand.u32 4294901760, %v2109_v13 }
 0x303   :  { %1785 = vmatmul.f32.vlgmr.msra.gmra.mxu3 %v2663_v43  ;;  %v2053_v43 = vand.u32 4294901760, %v2031_v36 }
 0x304   :  { %1762 = vmatmul.f32.gmra.mxu2 %v2678_v53  ;;  %1881 = vmatmul.f32.gmra.mxu1 %v1831_v48 }
 0x305   :  { %2171 = vmatpush.msra.mxu1 %v2053_v43  ;;  %2054 = vmatpush.msra.mxu2 %v2053_v43 }
 0x306   :  { %1836 = vmatmul.f32.gmra.mxu0 %v1835_v15  ;;  %2093 = vmatpush.msra.mxu3 %v2092_v32 }
 0x307   :  { %2173 = vmatpush.msra.mxu1 %v2055_v27  ;;  %2056 = vmatpush.msra.mxu2 %v2055_v27 }
 0x309   :  { %2175 = vmatpush.msra.mxu1 %v2057_v16  ;;  %2058 = vmatpush.msra.mxu2 %v2057_v16 }
 0x30b   :  { %1789 = vmatmul.f32.gmra.mxu3 %v2678_v53  ;;  %v2095_v53 = vsub.f32 %v2031_v36, %v2053_v43 }
 0x30c   :  { %1911 = vmatmul.f32.vlgmr.msrb.gmra.mxu2 %v1824_v60  ;;  %2011 = vmatmul.f32.vlgmr.msrb.gmra.mxu1 %v3013_v55 }
 0x30d   :  { %v2096_v31 = vand.u32 4294901760, %v2095_v53  ;;  %2138 = vmatpush.msra.mxu0 %v2095_v53  ;;  %2204 = vmatpush.msrb.mxu2 %v2090_v54 }
 0x30e   :  { %1982 = vmatmul.f32.vlgmr.msrb.gmra.mxu0 %v3013_v55 }
 0x30f   :  { %v2097_v63 = vsub.f32 %v2095_v53, %v2096_v31  ;;  %2141 = vmatpush.msra.mxu0 %v2101_v29  ;;  %2208 = vmatpush.msrb.mxu2 %v2096_v31 }
 0x311   :  { %v2098_v6 = vand.u32 4294901760, %v2097_v63  ;;  %2144 = vmatpush.msra.mxu0 %v2107_v21  ;;  %2212 = vmatpush.msrb.mxu2 %v2102_v30 }
 0x313   :  { %1943 = vmatmul.f32.vlgmr.msrb.gmra.mxu3 %v1825_v44  ;;  %2216 = vmatpush.msrb.mxu2 %v2108_v35 }
 0x314   :  { %1916 = vmatmul.f32.gmra.mxu2 %v1832_v0  ;;  %2015 = vmatmul.f32.gmra.mxu1 %v1831_v48 }
 0x315   :  { %2099 = vmatpush.msra.mxu3 %v2098_v6 }
 0x316   :  { %1986 = vmatmul.f32.gmra.mxu0 %v1831_v48 }
 0x317   :  { %2105 = vmatpush.msra.mxu3 %v2104_v37 }
 0x319   :  { %2111 = vmatpush.msra.mxu3 %v2110_v42 }
 0x31b   :  { %1949 = vmatmul.f32.gmra.mxu3 %v1833_v61 }
 0x31c   :  { %2239 = vmatpush.msrb.mxu3 %v2051_v49 }
 0x31e   :  { %2241 = vmatpush.msrb.mxu3 %v2053_v43 }
 0x320   :  { %2243 = vmatpush.msrb.mxu3 %v2055_v27 }
 0x322   :  { %2245 = vmatpush.msrb.mxu3 %v2057_v16 }
 0x369   :  { %v1726_v58 = vpop.f32.mrf.mxu1 }
 0x36b   :  { %v1696_v41 = vpop.f32.mrf.mxu0 }
 0x36e   :  { %v1627_v39 = vpop.f32.mrf.mxu2 }
 0x371   :  { %v1732_v34 = vpop.f32.mrf.mxu1 }
 0x373   :  { %v1701_v5 = vpop.f32.mrf.mxu0 }
 0x376   :  { %v1635_v45 = vpop.f32.mrf.mxu2  ;;  %v1666_v2 = vpop.f32.mrf.mxu3 }
 0x377   :  { %v1667_v9 = vadd.f32 %v1666_v2, %v1627_v39 }
 0x379   :  { %v1697_v3 = vadd.f32 %v1696_v41, %v1667_v9  ;;  %v1878_v22 = vpop.f32.mrf.mxu1 }
 0x37b   :  { %v1829_v19 = vpop.f32.mrf.mxu0  ;;  %v1727_v8 = vadd.f32 %v1726_v58, %v1697_v3 }
 0x37c   :  { %v1879_v49 = vadd.f32 %v1878_v22, %v1829_v19 }
 0x37e   :  { %v1670_v59 = vpop.f32.mrf.mxu3 }
 0x37f   :  { %v1759_v51 = vpop.f32.mrf.mxu2  ;;  %v1671_v20 = vadd.f32 %v1670_v59, %v1635_v45 }
 0x380   :  { %v1760_v12 = vadd.f32 %v1759_v51, %v1727_v8 }
 0x381   :  { %v1702_v28 = vadd.f32 %v1701_v5, %v1671_v20  ;;  %v1882_v48 = vpop.f32.mrf.mxu1 }
 0x383   :  { %v1733_v60 = vadd.f32 %v1732_v34, %v1702_v28  ;;  %v1837_v14 = vpop.f32.mrf.mxu0 }
 0x384   :  { %v1883_v16 = vadd.f32 %v1882_v48, %v1837_v14 }
 0x386   :  { %v1786_v55 = vpop.f32.mrf.mxu3 }
 0x387   :  { %v1763_v23 = vpop.f32.mrf.mxu2  ;;  %v1787_v57 = vadd.f32 %v1786_v55, %v1760_v12 }
 0x388   :  { %v1764_v40 = vadd.f32 %v1763_v23, %v1733_v60 }
 0x389   :  { %v2034_v38 = vsel %vm242_vm2, %v1787_v57, 0  ;;  %v2012_v27 = vpop.f32.mrf.mxu1 }
 0x38a   :  { %v2059_v10 = vand.u32 4294901760, %v2034_v38 }
 0x38b   :  { %v1983_v43 = vpop.f32.mrf.mxu0 }
 0x38c   :  { %v2060_v52 = vsub.f32 %v2034_v38, %v2059_v10  ;;  %2113 = vmatmul.f32.vlgmr.msra.gmra.mxu3 %v2059_v10 }
 0x38e   :  { %v2061_v44 = vand.u32 4294901760, %v2060_v52  ;;  %v1790_v0 = vpop.f32.mrf.mxu3  ;;  %2147 = vmatmul.f32.vlgmr.msra.gmra.mxu0 %v2060_v52 }
 0x38f   :  { %v1791_v1 = vadd.f32 %v1790_v0, %v1764_v40  ;;  %v1912_v61 = vpop.f32.mrf.mxu2 }
 0x390   :  { %v2062_v56 = vsub.f32 %v2060_v52, %v2061_v44  ;;  %2179 = vmatmul.f32.vlgmr.msra.gmra.mxu1 %v2061_v44  ;;  %v1913_v24 = vadd.f32 %v1912_v61, %v1879_v49 }
 0x391   :  { %v2037_v7 = vsel %vm242_vm2, %v1791_v1, 0  ;;  %v2016_v35 = vpop.f32.mrf.mxu1 }
 0x392   :  { %v2063_v15 = vand.u32 4294901760, %v2062_v56  ;;  %v2067_v4 = vand.u32 4294901760, %v2037_v7  ;;  %v2295_v56 = vld [vmem:[#allocation6 + $0xe0] sm:$0xff] }
 0x393   :  { %v1987_v6 = vpop.f32.mrf.mxu0  ;;  %v2316_v61 = vand.u32 4294901760, %v2295_v56 }
 0x394   :  { %v2068_v36 = vsub.f32 %v2037_v7, %v2067_v4  ;;  %2064 = vmatmul.f32.vlgmr.msra.gmra.mxu2 %v2063_v15  ;;  %2117 = vmatmul.f32.gmra.mxu3 %v2067_v4  ;;  %v2294_v7 = vld [vmem:[#allocation6 + $0xd8] sm:$0xff] }
 0x395   :  { %v2354_v15 = vsub.f32 %v2295_v56, %v2316_v61  ;;  %2434 = vmatpush.msra.mxu3 %v2316_v61  ;;  %2317 = vmatpush.msrb.mxu0 %v2316_v61 }
 0x396   :  { %v1944_v25 = vpop.f32.mrf.mxu3  ;;  %2152 = vmatmul.f32.gmra.mxu0 %v2068_v36  ;;  %v2069_v54 = vand.u32 4294901760, %v2068_v36 }
 0x397   :  { %v1945_v53 = vadd.f32 %v1944_v25, %v1913_v24  ;;  %v1917_v31 = vpop.f32.mrf.mxu2  ;;  %v2355_v49 = vand.u32 4294901760, %v2354_v15  ;;  %2400 = vmatpush.msra.mxu2 %v2354_v15 }
 0x398   :  { %2185 = vmatmul.f32.gmra.mxu1 %v2069_v54  ;;  %v2070_v62 = vsub.f32 %v2068_v36, %v2069_v54  ;;  %v1918_v63 = vadd.f32 %v1917_v31, %v1883_v16 }
 0x399   :  { %v1984_v17 = vadd.f32 %v1983_v43, %v1945_v53  ;;  %v2356_v43 = vsub.f32 %v2354_v15, %v2355_v49 }
 0x39a   :  { %v2071_v29 = vand.u32 4294901760, %v2070_v62 }
 0x39b   :  { %v2013_v32 = vadd.f32 %v2012_v27, %v1984_v17  ;;  %v2357_v27 = vand.u32 4294901760, %v2356_v43 }
 0x39c   :  { %2072 = vmatmul.f32.gmra.mxu2 %v2071_v29  ;;  %2247 = vmatmul.f32.vlgmr.msrb.gmra.mxu3 %v2059_v10 }
 0x39d   :  { %2021 = vrot.lane.b32.xlu1 %v2013_v32, %s2620_s6  ;;  %2358 = vmatpush.msrb.mxu1 %v2357_v27 }
 0x39e   :  { %v1950_v30 = vpop.f32.mrf.mxu3 }
 0x39f   :  { %v1951_v21 = vadd.f32 %v1950_v30, %v1918_v63 }
 0x3a1   :  { %v1988_v50 = vadd.f32 %v1987_v6, %v1951_v21  ;;  %v2270_v6 = vsub.f32 1.0, %v2968_v18 }
 0x3a3   :  { %v2017_v37 = vadd.f32 %v2016_v35, %v1988_v50  ;;  %v2268_v35 = vmul.f32 %v2983_v11, %v2968_v18  ;;  %v2267_v11 = vmul.f32 %v3003_v46, %v2971_v26 }
 0x3a4   :  { %2218 = vmatmul.f32.vlgmr.msrb.gmra.mxu2 %v2059_v10  ;;  %2251 = vmatmul.f32.gmra.mxu3 %v2067_v4 }
 0x3a5   :  { %2023 = vrot.lane.b32.xlu2 %v2017_v37, %s2620_s6 }
 0x3ac   :  { %2222 = vmatmul.f32.gmra.mxu2 %v2067_v4  ;;  %v2293_v4 = vld [vmem:[#allocation6 + $0xd0] sm:$0xff] }
 0x3ad   :  { %v2320_v24 = vand.u32 4294901760, %v2293_v4 }
 0x3af   :  { %v2366_v54 = vsub.f32 %v2293_v4, %v2320_v24 }
 0x3b1   :  { %v2367_v17 = vand.u32 4294901760, %v2366_v54 }
 0x3b3   :  { %v2368_v16 = vsub.f32 %v2366_v54, %v2367_v17 }
 0x3b5   :  { %v2369_v63 = vand.u32 4294901760, %v2368_v16 }
 0x3ff   :  { %v2024_v38 = vpop.permute.xlu2 %2023 }
 0x400   :  { %v2028_v10 = vadd.f32 %v2024_v38, %v2965_v47  ;;  %v2318_v47 = vand.u32 4294901760, %v2294_v7 }
 0x402   :  { %v2360_v36 = vsub.f32 %v2294_v7, %v2318_v47  ;;  %2436 = vmatpush.msra.mxu3 %v2318_v47  ;;  %2319 = vmatpush.msrb.mxu0 %v2318_v47 }
 0x404   :  { %v2361_v25 = vand.u32 4294901760, %v2360_v36  ;;  %2403 = vmatpush.msra.mxu2 %v2360_v36  ;;  %2438 = vmatpush.msra.mxu3 %v2320_v24 }
 0x405   :  { %2321 = vmatpush.msrb.mxu0 %v2320_v24 }
 0x406   :  { %v2362_v62 = vsub.f32 %v2360_v36, %v2361_v25  ;;  %2406 = vmatpush.msra.mxu2 %v2366_v54 }
 0x408   :  { %v2363_v29 = vand.u32 4294901760, %v2362_v62 }
 0x40a   :  { %2364 = vmatpush.msrb.mxu1 %v2363_v29 }
 0x40b   :  { %v2148_v58 = vpop.f32.mrf.mxu0 }
 0x40c   :  { %2370 = vmatpush.msrb.mxu1 %v2369_v63 }
 0x40d   :  { %v2180_v5 = vpop.f32.mrf.mxu1 }
 0x40f   :  { %v2114_v13 = vpop.f32.mrf.mxu3  ;;  %v2022_v52 = vpop.permute.xlu1 %2021 }
 0x410   :  { %v2027_v48 = vadd.f32 %v2022_v52, %v2962_v33  ;;  %v2292_v33 = vld [vmem:[#allocation6 + $0xc8] sm:$0xff] }
 0x411   :  { %v2322_v53 = vand.u32 4294901760, %v2292_v33 }
 0x413   :  { %v2153_v19 = vpop.f32.mrf.mxu0  ;;  %v2372_v31 = vsub.f32 %v2292_v33, %v2322_v53  ;;  %2440 = vmatpush.msra.mxu3 %v2322_v53  ;;  %2323 = vmatpush.msrb.mxu0 %v2322_v53 }
 0x415   :  { %v2186_v22 = vpop.f32.mrf.mxu1  ;;  %v2373_v32 = vand.u32 4294901760, %v2372_v31  ;;  %2409 = vmatpush.msra.mxu2 %v2372_v31  ;;  %2469 = vmatpush.msra.mxu0 %v2355_v49 }
 0x417   :  { %v2065_v42 = vpop.f32.mrf.mxu2  ;;  %v2118_v41 = vpop.f32.mrf.mxu3  ;;  %v2374_v30 = vsub.f32 %v2372_v31, %v2373_v32  ;;  %2473 = vmatpush.msra.mxu0 %v2361_v25 }
 0x418   :  { %v2115_v39 = vadd.f32 %v2114_v13, %v2065_v42 }
 0x419   :  { %v2375_v21 = vand.u32 4294901760, %v2374_v30  ;;  %2477 = vmatpush.msra.mxu0 %v2367_v17 }
 0x41a   :  { %v2149_v2 = vadd.f32 %v2148_v58, %v2115_v39  ;;  %v2269_v39 = vsub.f32 1.0, %v2971_v26 }
 0x41b   :  { %2376 = vmatpush.msrb.mxu1 %v2375_v21  ;;  %2481 = vmatpush.msra.mxu0 %v2373_v32 }
 0x41c   :  { %v2181_v9 = vadd.f32 %v2180_v5, %v2149_v2 }
 0x41d   :  { %2504 = vmatpush.msra.mxu1 %v2316_v61 }
 0x41f   :  { %v2073_v45 = vpop.f32.mrf.mxu2  ;;  %v2248_v59 = vpop.f32.mrf.mxu3  ;;  %2506 = vmatpush.msra.mxu1 %v2318_v47 }
 0x420   :  { %v2119_v34 = vadd.f32 %v2118_v41, %v2073_v45 }
 0x421   :  { %2508 = vmatpush.msra.mxu1 %v2320_v24 }
 0x422   :  { %v2154_v20 = vadd.f32 %v2153_v19, %v2119_v34 }
 0x423   :  { %2510 = vmatpush.msra.mxu1 %v2322_v53 }
 0x424   :  { %v2187_v12 = vadd.f32 %v2186_v22, %v2154_v20 }
 0x427   :  { %v2219_v51 = vpop.f32.mrf.mxu2  ;;  %v2252_v28 = vpop.f32.mrf.mxu3 }
 0x428   :  { %v2220_v3 = vadd.f32 %v2219_v51, %v2181_v9 }
 0x42a   :  { %v2249_v8 = vadd.f32 %v2248_v59, %v2220_v3 }
 0x42c   :  { %2257 = vrot.lane.b32.xlu1 %v2249_v8, %s2620_s6 }
 0x42f   :  { %v2223_v23 = vpop.f32.mrf.mxu2 }
 0x430   :  { %v2224_v55 = vadd.f32 %v2223_v23, %v2187_v12 }
 0x432   :  { %v2253_v57 = vadd.f32 %v2252_v28, %v2224_v55  ;;  %v2544_v55 = vld [vmem:[#allocation6 + $0xea] ss:$0 sm:$0xff] }
 0x434   :  { %2259 = vrot.lane.b32.xlu2 %v2253_v57, %s2620_s6 }
 0x48e   :  { %v2260_v60 = vpop.permute.xlu2 %2259 }
 0x48f   :  { %v2264_v14 = vadd.f32 %v2260_v60, %v2028_v10 }
 0x491   :  { %2553 = vtanh.f32 %v2264_v14 }
 0x497   :  { %v2554_v40 = vpop.eup %2553 }
 0x498   :  { %2275 = vrot.lane.b32.xlu1 %v2554_v40, %s2620_s6 }
 0x49e   :  { %v2258_v44 = vpop.permute.xlu1 %2257 }
 0x49f   :  { %v2263_v0 = vadd.f32 %v2258_v44, %v2027_v48 }
 0x4a1   :  { %2555 = vtanh.f32 %v2263_v0 }
 0x4a7   :  { %v2556_v1 = vpop.eup %2555 }
 0x4a8   :  { %2273 = vrot.lane.b32.xlu0 %v2556_v1, %s2620_s6 }
 0x50a   :  { %v2276_v50 = vpop.permute.xlu1 %2275 }
 0x50b   :  { %v2280_v37 = vmul.f32 %v2276_v50, %v2270_v6 }
 0x50d   :  { %v2282_v13 = vadd.f32 %v2280_v37, %v2268_v35 }
 0x50f   :  { %2557 = vtanh.f32 %v2282_v13  ;;  %2286 = vst.msk [vmem:[#allocation3 + $0x8] sm:$0xff] %vm242_vm2, %v2282_v13  ;;  %v2523_v42 = vsel %vm242_vm2, %v2282_v13, 0.0 }
 0x510   :  { %2525 = vst [vmem:[%s3092_s4 + $0x18] sm:$0xff] %v2523_v42 }
 0x515   :  { %v2558_v41 = vpop.eup %2557 }
 0x516   :  { %2288 = vst.msk [vmem:[#allocation2 + $0x8] sm:$0xff] %vm242_vm2, %v2558_v41  ;;  %v2302_v5 = vsel %vm242_vm2, %v2558_v41, 0 }
 0x517   :  { %v2332_v26 = vand.u32 4294901760, %v2302_v5 }
 0x519   :  { %v2333_v3 = vsub.f32 %v2302_v5, %v2332_v26 }
 0x51a   :  { %v2274_v18 = vpop.permute.xlu0 %2273 }
 0x51b   :  { %v2279_v58 = vmul.f32 %v2274_v18, %v2269_v39  ;;  %v2334_v8 = vand.u32 4294901760, %v2333_v3 }
 0x51d   :  { %v2281_v45 = vadd.f32 %v2279_v58, %v2267_v11  ;;  %v2335_v22 = vsub.f32 %v2333_v3, %v2334_v8 }
 0x51f   :  { %2559 = vtanh.f32 %v2281_v45  ;;  %2285 = vst.msk [vmem:[#allocation3] sm:$0xff] %vm242_vm2, %v2281_v45  ;;  %v2522_v2 = vsel %vm242_vm2, %v2281_v45, 0.0  ;;  %v2336_v12 = vand.u32 4294901760, %v2335_v22 }
 0x520   :  { %2524 = vst [vmem:[%s3092_s4 + $0x8] sm:$0xff] %v2522_v2 }
 0x525   :  { %v2560_v34 = vpop.eup %2559 }
 0x526   :  { %2287 = vst.msk [vmem:[#allocation2] sm:$0xff] %vm242_vm2, %v2560_v34  ;;  %v2299_v9 = vsel %vm242_vm2, %v2560_v34, 0 }
 0x527   :  { %v2324_v59 = vand.u32 4294901760, %v2299_v9 }
 0x529   :  { %2378 = vmatmul.f32.vlgmr.msrb.gmra.mxu1 %v2324_v59  ;;  %v2325_v46 = vsub.f32 %v2299_v9, %v2324_v59 }
 0x52b   :  { %2412 = vmatmul.f32.vlgmr.msra.gmra.mxu2 %v2325_v46  ;;  %v2326_v51 = vand.u32 4294901760, %v2325_v46 }
 0x52d   :  { %2444 = vmatmul.f32.vlgmr.msra.gmra.mxu3 %v2326_v51  ;;  %v2327_v19 = vsub.f32 %v2325_v46, %v2326_v51 }
 0x52f   :  { %v2328_v20 = vand.u32 4294901760, %v2327_v19 }
 0x531   :  { %2329 = vmatmul.f32.vlgmr.msrb.gmra.mxu0 %v2328_v20  ;;  %2382 = vmatmul.f32.gmra.mxu1 %v2332_v26 }
 0x533   :  { %2417 = vmatmul.f32.gmra.mxu2 %v2333_v3 }
 0x535   :  { %2450 = vmatmul.f32.gmra.mxu3 %v2334_v8 }
 0x539   :  { %2337 = vmatmul.f32.gmra.mxu0 %v2336_v12  ;;  %2512 = vmatmul.f32.vlgmr.msra.gmra.mxu1 %v2324_v59 }
 0x541   :  { %2483 = vmatmul.f32.vlgmr.msra.gmra.mxu0 %v2324_v59  ;;  %2516 = vmatmul.f32.gmra.mxu1 %v2332_v26 }
 0x549   :  { %2487 = vmatmul.f32.gmra.mxu0 %v2332_v26 }
 0x5a6   :  { %v2379_v23 = vpop.f32.mrf.mxu1 }
 0x5ae   :  { %v2330_v28 = vpop.f32.mrf.mxu0  ;;  %v2383_v38 = vpop.f32.mrf.mxu1 }
 0x5af   :  { %v2331_v57 = vadd.f32 %v2544_v55, %v2330_v28  ;;  %v2413_v60 = vpop.f32.mrf.mxu2 }
 0x5b0   :  { %v2445_v48 = vpop.f32.mrf.mxu3 }
 0x5b1   :  { %v2380_v10 = vadd.f32 %v2379_v23, %v2331_v57 }
 0x5b3   :  { %v2414_v52 = vadd.f32 %v2413_v60, %v2380_v10 }
 0x5b5   :  { %v2446_v44 = vadd.f32 %v2445_v48, %v2414_v52 }
 0x5b6   :  { %v2338_v14 = vpop.f32.mrf.mxu0  ;;  %v2513_v1 = vpop.f32.mrf.mxu1 }
 0x5b7   :  { %v2339_v40 = vadd.f32 %v2544_v55, %v2338_v14  ;;  %v2418_v7 = vpop.f32.mrf.mxu2 }
 0x5b8   :  { %v2451_v4 = vpop.f32.mrf.mxu3 }
 0x5b9   :  { %v2384_v0 = vadd.f32 %v2383_v38, %v2339_v40 }
 0x5bb   :  { %v2419_v15 = vadd.f32 %v2418_v7, %v2384_v0 }
 0x5bd   :  { %v2452_v49 = vadd.f32 %v2451_v4, %v2419_v15 }
 0x5be   :  { %v2484_v56 = vpop.f32.mrf.mxu0  ;;  %v2517_v33 = vpop.f32.mrf.mxu1 }
 0x5bf   :  { %v2485_v61 = vadd.f32 %v2484_v56, %v2446_v44 }
 0x5c1   :  { %v2514_v47 = vadd.f32 %v2513_v1, %v2485_v61 }
 0x5c3   :  { %2520 = vst [vmem:[%s3092_s4] sm:$0xff] %v2514_v47 }
 0x5c6   :  { %v2488_v36 = vpop.f32.mrf.mxu0 }
 0x5c7   :  { %v2489_v24 = vadd.f32 %v2488_v36, %v2452_v49 }
 0x5c9   :  { %v2518_v43 = vadd.f32 %v2517_v33, %v2489_v24 }
 0x5cb   :  { %2521 = vst [vmem:[%s3092_s4 + $0x10] sm:$0xff] %v2518_v43 }
 0x5cc   :  { %2530 = vsyncpa [#allocation5], 1 }
 0x5cd   :  { %2531 = vsyncpa [#allocation7], 1 }

</bundles_post_ra>
